<compile_context>
chip_gen: v5e
topology: v5e:2x2
jax: 0.10.0
libtpu: 0.0.40
codegen_flags: <defaults>
</compile_context>

<pallas_src>
import functools

import jax
import jax.numpy as jnp
from jax.experimental import pallas as pl
from jax.experimental.pallas import tpu as pltpu


# ---------------------------------------------------------------------------
# Kernel
# ---------------------------------------------------------------------------
def generator_kernel(x_ref, w1_ref, b1_ref, w2_ref, b2_ref, o_ref):
    # x_ref : (TB, K)  bf16     w1_ref: (K, H) bf16   b1_ref: (1, H) f32
    # w2_ref: (H, N)   bf16     b2_ref: (1, N) f32    o_ref : (TB, N) bf16/f32
    #
    # First linear layer on the MXU, f32 accumulation.
    h = jnp.dot(x_ref[...], w1_ref[...], preferred_element_type=jnp.float32)
    # Bias + LeakyReLU(0.2) in f32 on the VPU (mul + max, no select).
    h = h + b1_ref[...]
    h = jnp.maximum(h, 0.2 * h)
    # Dropout == identity (inference forward pass).
    # Second linear layer: cast activations to bf16 for the MXU, accumulate f32.
    out = jnp.dot(h.astype(w2_ref.dtype), w2_ref[...],
                  preferred_element_type=jnp.float32)
    out = out + b2_ref[...]
    o_ref[...] = out.astype(o_ref.dtype)


# ---------------------------------------------------------------------------
# Helpers
# ---------------------------------------------------------------------------
def _round_up(x, m):
    return ((x + m - 1) // m) * m


def _pad_axis(x, axis, multiple):
    pad = (-x.shape[axis]) % multiple
    if pad == 0:
        return x
    widths = [(0, 0)] * x.ndim
    widths[axis] = (0, pad)
    return jnp.pad(x, widths)


def _choose_block_b(batch):
    """Adaptive batch tile: big tiles amortize per-step overhead, but keep
    >= 2 grid steps when possible so both v7x TensorCores get work."""
    bp = _round_up(batch, 128)
    if bp >= 1024:
        return 512
    if bp >= 256:
        return bp // 2          # multiple of 64 -> sublane-aligned; 2 steps
    return bp                   # tiny batch: single step


# ---------------------------------------------------------------------------
# Parameter preparation (call ONCE at init; reuse every forward call)
# ---------------------------------------------------------------------------
def prepare_generator_params(w1, b1, w2, b2, compute_dtype=jnp.bfloat16):
    """Cast weights to bf16 and lane-pad everything to multiples of 128.

    w1: (noise_size, hidden)   b1: (hidden,)
    w2: (hidden, output_size)  b2: (output_size,)
    Returns padded (w1p, b1p, w2p, b2p) ready for generator_forward.
    Padding with zeros is mathematically inert (LeakyReLU(0) == 0).
    """
    w1p = _pad_axis(_pad_axis(w1.astype(compute_dtype), 0, 128), 1, 128)
    w2p = _pad_axis(_pad_axis(w2.astype(compute_dtype), 0, 128), 1, 128)
    b1p = _pad_axis(b1.astype(jnp.float32).reshape(1, -1), 1, 128)
    b2p = _pad_axis(b2.astype(jnp.float32).reshape(1, -1), 1, 128)
    return w1p, b1p, w2p, b2p


# ---------------------------------------------------------------------------
# Host wrapper
# ---------------------------------------------------------------------------
@functools.partial(jax.jit, static_argnames=("out_size", "out_dtype"))
def generator_forward(noise, w1p, b1p, w2p, b2p, *, out_size,
                      out_dtype=jnp.bfloat16):
    """Fused Generator forward pass as a batch-tiled Pallas kernel.

    noise : (B, noise_size) f32/bf16 (padded internally)
    w1p/b1p/w2p/b2p : pre-padded params from prepare_generator_params.
    Returns (B, out_size) in out_dtype (default bf16).
    """
    batch = noise.shape[0]
    block_b = _choose_block_b(batch)

    # Only the noise is padded per call (lane-dense K, batch -> tile multiple).
    x = _pad_axis(_pad_axis(noise.astype(w1p.dtype), 1, 128), 0, block_b)

    bp, k = x.shape
    h = w1p.shape[1]
    n = w2p.shape[1]
    grid = (bp // block_b,)

    flops = 2 * bp * (k * h + h * n)
    out_bytes = bp * n * jnp.dtype(out_dtype).itemsize
    bytes_accessed = (x.size * x.dtype.itemsize
                      + w1p.size * w1p.dtype.itemsize
                      + w2p.size * w2p.dtype.itemsize
                      + b1p.size * 4 + b2p.size * 4 + out_bytes)

    out_padded = pl.pallas_call(
        generator_kernel,
        out_shape=jax.ShapeDtypeStruct((bp, n), out_dtype),
        grid_spec=pltpu.PrefetchScalarGridSpec(
            num_scalar_prefetch=0,
            grid=grid,
            in_specs=[
                pl.BlockSpec((block_b, k), lambda i: (i, 0)),  # noise tile
                pl.BlockSpec((k, h), lambda i: (0, 0)),        # w1 (resident)
                pl.BlockSpec((1, h), lambda i: (0, 0)),        # b1 (resident)
                pl.BlockSpec((h, n), lambda i: (0, 0)),        # w2 (resident)
                pl.BlockSpec((1, n), lambda i: (0, 0)),        # b2 (resident)
            ],
            out_specs=pl.BlockSpec((block_b, n), lambda i: (i, 0)),
        ),
        compiler_params=pltpu.CompilerParams(
            dimension_semantics=("parallel",),
            vmem_limit_bytes=32 * 1024 * 1024,
        ),
        cost_estimate=pl.CostEstimate(
            flops=flops, transcendentals=0, bytes_accessed=bytes_accessed),
    )(x, w1p, b1p, w2p, b2p)

    # Skip the de-padding slice entirely when shapes are already aligned.
    if bp == batch and n == out_size:
        return out_padded
    return out_padded[:batch, :out_size]


# ---------------------------------------------------------------------------
# Params + reference
# ---------------------------------------------------------------------------
def init_generator_params(key, noise_size, hidden_size, output_size,
                          dtype=jnp.float32):
    """Deterministic parameter init. Weights stored as (in, out) = W.T of
    nn.Linear's (out, in); biases 1-D like nn.Linear."""
    k1, k2, k3, k4 = jax.random.split(key, 4)
    w1 = jax.random.normal(k1, (noise_size, hidden_size), dtype) * 0.05
    b1 = jax.random.normal(k2, (hidden_size,), dtype) * 0.01
    w2 = jax.random.normal(k3, (hidden_size, output_size), dtype) * 0.05
    b2 = jax.random.normal(k4, (output_size,), dtype) * 0.01
    return w1, b1, w2, b2


def generator_reference(noise, w1, b1, w2, b2):
    """Pure-JAX f32 reference (inference forward pass, dropout = identity)."""
    h = noise @ w1 + b1
    h = jnp.where(h > 0, h, 0.2 * h)
    return h @ w2 + b2


# ---------------------------------------------------------------------------
# Demo / correctness check
# ---------------------------------------------------------------------------
if __name__ == "__main__":
    # Module defaults: noise_size=100, hidden_sizes=[512], output_size=512.
    # noise_size=100 exercises the lane-padding path; batch=256 -> 2 grid steps.
    batch, noise_size, hidden_size, output_size = 256, 100, 512, 512

    key = jax.random.PRNGKey(0)
    k_noise, k_params = jax.random.split(key)

    noise = jax.random.normal(k_noise, (batch, noise_size), jnp.float32)
    w1, b1, w2, b2 = init_generator_params(
        k_params, noise_size, hidden_size, output_size)

    # One-time parameter preparation (cast + pad), reused every call.
    w1p, b1p, w2p, b2p = prepare_generator_params(w1, b1, w2, b2)

    out = generator_forward(noise, w1p, b1p, w2p, b2p, out_size=output_size)
    out = jax.block_until_ready(out)

    ref = generator_reference(noise, w1, b1, w2, b2)
    assert out.shape == (batch, output_size)
    assert out.dtype == jnp.bfloat16
    # bf16 MXU inputs/output with f32 accumulation -> loosened tolerance.
    assert jnp.allclose(out.astype(jnp.float32), ref, atol=5e-2, rtol=5e-2), (
        float(jnp.max(jnp.abs(out.astype(jnp.float32) - ref))))

    print("KERNEL_OK")
</pallas_src>

<mosaic_0001>
module attributes {stable_mosaic.version = 11 : i64} {
  func.func @generator_kernel(%arg0: i32, %arg1: memref<128x128xbf16, #tpu.memory_space<vmem>>, %arg2: memref<128x512xbf16, #tpu.memory_space<vmem>>, %arg3: memref<1x512xf32, #tpu.memory_space<vmem>>, %arg4: memref<512x512xbf16, #tpu.memory_space<vmem>>, %arg5: memref<1x512xf32, #tpu.memory_space<vmem>>, %arg6: memref<128x512xbf16, #tpu.memory_space<vmem>>) attributes {dimension_semantics = [#tpu.dimension_semantics<parallel>], iteration_bounds = array<i64: 2>, scalar_prefetch = 0 : i64, scratch_operands = 0 : i64, tpu.core_type = #tpu.core_type<tc>, window_params = [{transform_indices = @transform_0, window_bounds = array<i64: 128, 128>}, {pipeline_mode = #tpu.pipeline_mode<synchronous>, transform_indices = @transform_1, window_bounds = array<i64: 128, 512>}, {pipeline_mode = #tpu.pipeline_mode<synchronous>, transform_indices = @transform_2, window_bounds = array<i64: 1, 512>}, {pipeline_mode = #tpu.pipeline_mode<synchronous>, transform_indices = @transform_3, window_bounds = array<i64: 512, 512>}, {pipeline_mode = #tpu.pipeline_mode<synchronous>, transform_indices = @transform_4, window_bounds = array<i64: 1, 512>}, {transform_indices = @transform_5, window_bounds = array<i64: 128, 512>}]} {
    %c0 = arith.constant 0 : index
    %c0_0 = arith.constant 0 : index
    %0 = vector.load %arg1[%c0, %c0_0] : memref<128x128xbf16, #tpu.memory_space<vmem>>, vector<128x128xbf16>
    %c0_1 = arith.constant 0 : index
    %c0_2 = arith.constant 0 : index
    %1 = vector.load %arg2[%c0_1, %c0_2] : memref<128x512xbf16, #tpu.memory_space<vmem>>, vector<128x512xbf16>
    %cst = arith.constant dense<0.000000e+00> : vector<128x512xf32>
    %2 = tpu.matmul %0, %1, %cst {dimension_numbers = #tpu.dot_dimension_numbers<[1], [0], [0], [1], [0, 0, 1, 1], [], []>} : vector<128x128xbf16>, vector<128x512xbf16>, vector<128x512xf32> -> vector<128x512xf32>
    %c0_3 = arith.constant 0 : index
    %c0_4 = arith.constant 0 : index
    %3 = vector.load %arg3[%c0_3, %c0_4] : memref<1x512xf32, #tpu.memory_space<vmem>>, vector<1x512xf32>
    %4 = vector.broadcast %3 : vector<1x512xf32> to vector<128x512xf32>
    %5 = arith.addf %2, %4 : vector<128x512xf32>
    %cst_5 = arith.constant 2.000000e-01 : f32
    %6 = vector.broadcast %cst_5 : f32 to vector<128x512xf32>
    %7 = arith.mulf %6, %5 : vector<128x512xf32>
    %8 = arith.maximumf %5, %7 : vector<128x512xf32>
    %9 = arith.truncf %8 : vector<128x512xf32> to vector<128x512xbf16>
    %c0_6 = arith.constant 0 : index
    %c0_7 = arith.constant 0 : index
    %10 = vector.load %arg4[%c0_6, %c0_7] : memref<512x512xbf16, #tpu.memory_space<vmem>>, vector<512x512xbf16>
    %cst_8 = arith.constant dense<0.000000e+00> : vector<128x512xf32>
    %11 = tpu.matmul %9, %10, %cst_8 {dimension_numbers = #tpu.dot_dimension_numbers<[1], [0], [0], [1], [0, 0, 1, 1], [], []>} : vector<128x512xbf16>, vector<512x512xbf16>, vector<128x512xf32> -> vector<128x512xf32>
    %c0_9 = arith.constant 0 : index
    %c0_10 = arith.constant 0 : index
    %12 = vector.load %arg5[%c0_9, %c0_10] : memref<1x512xf32, #tpu.memory_space<vmem>>, vector<1x512xf32>
    %13 = vector.broadcast %12 : vector<1x512xf32> to vector<128x512xf32>
    %14 = arith.addf %11, %13 : vector<128x512xf32>
    %15 = arith.truncf %14 : vector<128x512xf32> to vector<128x512xbf16>
    %c0_11 = arith.constant 0 : index
    %c0_12 = arith.constant 0 : index
    %16 = vector.load %arg6[%c0_11, %c0_12] : memref<128x512xbf16, #tpu.memory_space<vmem>>, vector<128x512xbf16>
    tpu.vector_store %arg6[%c0_11, %c0_12], %15 {strides = array<i32>} : memref<128x512xbf16, #tpu.memory_space<vmem>>, vector<128x512xbf16>,
    return
  }
  func.func @transform_0(%arg0: i32) -> (i32, i32) {
    %c0_i32 = arith.constant 0 : i32
    %c0_i32_0 = arith.constant 0 : i32
    return %arg0, %c0_i32 : i32, i32
  }
  func.func @transform_1(%arg0: i32) -> (i32, i32) {
    %c0_i32 = arith.constant 0 : i32
    %c0_i32_0 = arith.constant 0 : i32
    %c0_i32_1 = arith.constant 0 : i32
    return %c0_i32, %c0_i32_0 : i32, i32
  }
  func.func @transform_2(%arg0: i32) -> (i32, i32) {
    %c0_i32 = arith.constant 0 : i32
    %c0_i32_0 = arith.constant 0 : i32
    %c0_i32_1 = arith.constant 0 : i32
    return %c0_i32, %c0_i32_0 : i32, i32
  }
  func.func @transform_3(%arg0: i32) -> (i32, i32) {
    %c0_i32 = arith.constant 0 : i32
    %c0_i32_0 = arith.constant 0 : i32
    %c0_i32_1 = arith.constant 0 : i32
    return %c0_i32, %c0_i32_0 : i32, i32
  }
  func.func @transform_4(%arg0: i32) -> (i32, i32) {
    %c0_i32 = arith.constant 0 : i32
    %c0_i32_0 = arith.constant 0 : i32
    %c0_i32_1 = arith.constant 0 : i32
    return %c0_i32, %c0_i32_0 : i32, i32
  }
  func.func @transform_5(%arg0: i32) -> (i32, i32) {
    %c0_i32 = arith.constant 0 : i32
    %c0_i32_0 = arith.constant 0 : i32
    return %arg0, %c0_i32 : i32, i32
  }
}

</mosaic_0001>

<bundles_post_ra>
// kernel: generator_forward.1
= control target key start
LH: loop header
LB: loop body
LE: loop exit
PB: predicated region body
PF: predicated region fallthrough
CT: control target
= control target key end

     0   :  { %10 = vsyncpa [#allocation3], 0  ;;  %s4424_s0 = inlined_call_operand.vmem [shape: bf16[256,128], index: 0, kind: input, shape index: {}]   ;;  %s4425_s1 = inlined_call_operand.vmem [shape: bf16[128,512], index: 1, kind: input, shape index: {}]   ;;  %s4426_s2 = inlined_call_operand.vmem [shape: f32[1,512], index: 2, kind: input, shape index: {}]   ;;  %s4427_s3 = inlined_call_operand.hbm [shape: bf16[512,512], index: 3, kind: input, shape index: {}]   ;;  %s4428_s4 = inlined_call_operand.vmem [shape: f32[1,512], index: 4, kind: input, shape index: {}]   ;;  %s4429_s5 = inlined_call_operand.hbm [shape: bf16[256,512], index: 5, kind: output, shape index: {}]  }
   0x1   :  { %11 = vsyncpa [#allocation4], 0 }
   0x2   :  { %13 = vsyncpa [#allocation4 + $0x1], 0  ;;  %s3627_s18 = smov 0   ;;  %s3629_s19 = smov 0  }
   0x3   :  { %s3631_s20 = smov 0   ;;  %s3633_s21 = smov 0  }
   0x4 LB: > { %s3648_s22 = sadd.s32 4294967295, %s3590_s21   ;;  %s2582_s23 = sadd.s32 4294967294, %s3590_s21   ;;  %s3590_s21 = sphi %s3633_s21, %s4451_s21   ;;  %s3586_s20 = sphi %s3631_s20, %s4450_s20   ;;  %s3582_s19 = sphi %s3629_s19, %s4449_s19   ;;  %s3578_s18 = sphi %s3627_s18, %s4448_s18  }
   0x5   : > { %s3652_s24 = sadd.s32 1, %s3590_s21   ;;  %s136_s25 = sadd.s32 1, %s3586_s20 }
   0x6   : > { %s133_s26 = ssub.s32 %s3590_s21, %s3652_s24  ;;  %p146_p0 = scmp.ne.s32.totalorder %s3586_s20, %s3582_s19 }
   0x7   : > { %p134_p1 = scmp.eq.s32.totalorder %s133_s26, 0  ;;  %p147_p2 = scmp.eq.s32.totalorder %s3648_s22, 1 }
   0x8   : > { %p152_p3 = scmp.ne.s32.totalorder %s3582_s19, %s3578_s18  ;;  %p153_p4 = scmp.eq.s32.totalorder %s2582_s23, 1 }
   0x9   : > { %s3663_s27 = scalar_select %p134_p1, %s3586_s20, %s136_s25  }
   0xa   : > { %p3665_p5 = por %p147_p2, %p146_p0  ;;  %p3669_p6 = por %p153_p4, %p152_p3 }
   0xb   : > { %p2583_p7 = scmp.ge.s32.totalorder %s3590_s21, 1  ;;  %p160_p8 = scmp.lt.s32.totalorder %s3590_s21, 3 }
   0xc   : > { %p3453_p9 = scmp.eq.s32.totalorder %s3648_s22, 0  ;;  %s177_s7 = sshll.u32 %s4427_s3, 4  ;;  %s178_s7 = int_to_ptr.hbm [resolvable:$true] %s177_s7 }
   0xd   : > { %p161_p10 = pnand %p2583_p7, %p160_p8  ;;  %s3592_s8 = smov [#allocation2]  }
   0xe   : > { %s179_s9 = sshll.u32 %s3592_s8, 4  ;;  %s3593_s10 = smov 256   ;;  %s180_s9 = int_to_ptr.vmem [resolvable:$true] %s179_s9 }
   0xf   : > { %p3445_p11 = pneg %p161_p10  ;;  %s3594_s11 = smov 16  }
  0x10   : > { %207 = sbr.rel (%p161_p10) target bundleno = 852 (0x354), region = 40 }
  0x11   : > { %p3446_p12 = pnand %p3453_p9, %p3445_p11 }
  0x13   : > { %3448 = dma.hbm_to_vmem [thread:$0]  (!%p3446_p12), %s178_s7, 16384, %s180_s9, [#allocation3], %s3593_s10, %s3593_s10, %s3594_s11  }
  0x15   : > { %3569 = dma.done.wait (%p3453_p9), [#allocation3], 16384  }
  0x16   : > { %3571 = vsyncadd (%p3453_p9), [#allocation3], 4294950912  ;;  %v2737_v0 = vld [vmem:[%s4425_s1 + $0xe0] sm:$0xf]  ;;  %v3307_v1 = vld [vmem:[%s4425_s1 + $0xec] sm:$0xf0] }
  0x17   : > { %v3305_v2 = vld [vmem:[%s4425_s1 + $0xe4] sm:$0xf]  ;;  %v2738_v3 = vor.u32 %v3307_v1, %v2737_v0  ;;  %v2739_v4 = vld [vmem:[%s4425_s1 + $0xf0] sm:$0xf0]  ;;  %v2745_v5 = vld [vmem:[%s4425_s1 + $0xe8] sm:$0xf] }
  0x18   : > { %v3308_v6 = vld [vmem:[%s4425_s1 + $0xf4] sm:$0xf0]  ;;  %v2742_v7 = vor.u32 %v3305_v2, %v2739_v4  ;;  %v3306_v9 = vld [vmem:[%s4425_s1 + $0xec] sm:$0xf]  ;;  %v2747_v10 = vld [vmem:[%s4425_s1 + $0xf8] sm:$0xf0] }
  0x19   : > { %v2746_v8 = vor.u32 %v3308_v6, %v2745_v5  ;;  %v2721_v11 = vld [vmem:[%s4425_s1 + $0xc0] sm:$0xf]  ;;  %509 = vmatpush.bf16.msra.mxu0 %v2738_v3  ;;  %v2750_v12 = vor.u32 %v3306_v9, %v2747_v10  ;;  %v3303_v13 = vld [vmem:[%s4425_s1 + $0xcc] sm:$0xf0]  ;;  %v3301_v14 = vld [vmem:[%s4425_s1 + $0xc4] sm:$0xf] }
  0x1a   : > { %v2723_v15 = vld [vmem:[%s4425_s1 + $0xd0] sm:$0xf0]  ;;  %558 = vmatpush.bf16.msra.mxu1 %v2742_v7  ;;  %v2722_v16 = vor.u32 %v3303_v13, %v2721_v11  ;;  %v2729_v18 = vld [vmem:[%s4425_s1 + $0xc8] sm:$0xf]  ;;  %v3304_v19 = vld [vmem:[%s4425_s1 + $0xd4] sm:$0xf0] }
  0x1b   : > { %607 = vmatpush.bf16.msra.mxu2 %v2746_v8  ;;  %v2726_v17 = vor.u32 %v3301_v14, %v2723_v15  ;;  %v3302_v20 = vld [vmem:[%s4425_s1 + $0xcc] sm:$0xf]  ;;  %656 = vmatpush.bf16.msra.mxu3 %v2750_v12  ;;  %v2730_v21 = vor.u32 %v3304_v19, %v2729_v18  ;;  %v2731_v22 = vld [vmem:[%s4425_s1 + $0xd8] sm:$0xf0]  ;;  %v2705_v23 = vld [vmem:[%s4425_s1 + $0xa0] sm:$0xf] }
  0x1c   : > { %v3299_v24 = vld [vmem:[%s4425_s1 + $0xac] sm:$0xf0]  ;;  %v2734_v25 = vor.u32 %v3302_v20, %v2731_v22  ;;  %v3297_v26 = vld [vmem:[%s4425_s1 + $0xa4] sm:$0xf]  ;;  %v2707_v27 = vld [vmem:[%s4425_s1 + $0xb0] sm:$0xf0] }
  0x1d   : > { %v2713_v28 = vld [vmem:[%s4425_s1 + $0xa8] sm:$0xf]  ;;  %510 = vmatpush.bf16.msra.mxu0 %v2722_v16  ;;  %v2706_v29 = vor.u32 %v3299_v24, %v2705_v23  ;;  %v3300_v30 = vld [vmem:[%s4425_s1 + $0xb4] sm:$0xf0]  ;;  %v3298_v31 = vld [vmem:[%s4425_s1 + $0xac] sm:$0xf]  ;;  %v2710_v33 = vor.u32 %v3297_v26, %v2707_v27 }
  0x1e   : > { %v2715_v32 = vld [vmem:[%s4425_s1 + $0xb8] sm:$0xf0]  ;;  %559 = vmatpush.bf16.msra.mxu1 %v2726_v17  ;;  %v2714_v34 = vor.u32 %v3300_v30, %v2713_v28  ;;  %v2689_v35 = vld [vmem:[%s4425_s1 + $0x80] sm:$0xf]  ;;  %v3295_v36 = vld [vmem:[%s4425_s1 + $0x8c] sm:$0xf0] }
  0x1f   : > { %608 = vmatpush.bf16.msra.mxu2 %v2730_v21  ;;  %v3293_v37 = vld [vmem:[%s4425_s1 + $0x84] sm:$0xf]  ;;  %657 = vmatpush.bf16.msra.mxu3 %v2734_v25  ;;  %v2718_v38 = vor.u32 %v3298_v31, %v2715_v32  ;;  %v2691_v39 = vld [vmem:[%s4425_s1 + $0x90] sm:$0xf0]  ;;  %v2697_v40 = vld [vmem:[%s4425_s1 + $0x88] sm:$0xf]  ;;  %v2690_v44 = vor.u32 %v3295_v36, %v2689_v35 }
  0x20   : > { %v3296_v41 = vld [vmem:[%s4425_s1 + $0x94] sm:$0xf0]  ;;  %v3294_v42 = vld [vmem:[%s4425_s1 + $0x8c] sm:$0xf]  ;;  %v2699_v43 = vld [vmem:[%s4425_s1 + $0x98] sm:$0xf0]  ;;  %v2694_v45 = vor.u32 %v3293_v37, %v2691_v39 }
  0x21   : > { %511 = vmatpush.bf16.msra.mxu0 %v2706_v29  ;;  %s2589_s12 = sshll.u32 %s3648_s22, 4  ;;  %v2698_v46 = vor.u32 %v3296_v41, %v2697_v40  ;;  %v2673_v47 = vld [vmem:[%s4425_s1 + $0x60] sm:$0xf]  ;;  %v3291_v48 = vld [vmem:[%s4425_s1 + $0x6c] sm:$0xf0]  ;;  %v2702_v50 = vor.u32 %v3294_v42, %v2699_v43  ;;  %s233_s9 = sand.u32 1, %s3582_s19  }
  0x22   : > { %560 = vmatpush.bf16.msra.mxu1 %v2710_v33  ;;  %v3289_v49 = vld [vmem:[%s4425_s1 + $0x64] sm:$0xf]  ;;  %v2675_v51 = vld [vmem:[%s4425_s1 + $0x70] sm:$0xf0]  ;;  %v2681_v52 = vld [vmem:[%s4425_s1 + $0x68] sm:$0xf]  ;;  %v2674_v56 = vor.u32 %v3291_v48, %v2673_v47 }
  0x23   : > { %609 = vmatpush.bf16.msra.mxu2 %v2714_v34  ;;  %658 = vmatpush.bf16.msra.mxu3 %v2718_v38  ;;  %v3292_v53 = vld [vmem:[%s4425_s1 + $0x74] sm:$0xf0]  ;;  %v3290_v54 = vld [vmem:[%s4425_s1 + $0x6c] sm:$0xf]  ;;  %v2683_v55 = vld [vmem:[%s4425_s1 + $0x78] sm:$0xf0]  ;;  %v2678_v57 = vor.u32 %v3289_v49, %v2675_v51 }
  0x24   : > { %p3808_p13 = scmp.lt.s32.totalorder %s2589_s12, 31  ;;  %v2682_v58 = vor.u32 %v3292_v53, %v2681_v52  ;;  %v2657_v59 = vld [vmem:[%s4425_s1 + $0x40] sm:$0xf]  ;;  %v3287_v60 = vld [vmem:[%s4425_s1 + $0x4c] sm:$0xf0]  ;;  %v2686_v62 = vor.u32 %v3290_v54, %v2683_v55  ;;  %s2588_s10 = sshll.u32 %s233_s9, 8 }
  0x25   : > { %512 = vmatpush.bf16.msra.mxu0 %v2690_v44  ;;  %v3285_v61 = vld [vmem:[%s4425_s1 + $0x44] sm:$0xf]  ;;  %v2659_v63 = vld [vmem:[%s4425_s1 + $0x50] sm:$0xf0]  ;;  %v2665_v0 = vld [vmem:[%s4425_s1 + $0x48] sm:$0xf]  ;;  %v2658_v4 = vor.u32 %v3287_v60, %v2657_v59 }
  0x26   : > { %561 = vmatpush.bf16.msra.mxu1 %v2694_v45  ;;  %v3288_v1 = vld [vmem:[%s4425_s1 + $0x54] sm:$0xf0]  ;;  %v3286_v2 = vld [vmem:[%s4425_s1 + $0x4c] sm:$0xf]  ;;  %v2667_v3 = vld [vmem:[%s4425_s1 + $0x58] sm:$0xf0]  ;;  %v2662_v5 = vor.u32 %v3285_v61, %v2659_v63 }
  0x27   : > { %610 = vmatpush.bf16.msra.mxu2 %v2698_v46  ;;  %659 = vmatpush.bf16.msra.mxu3 %v2702_v50  ;;  %s4453_s12 = smov (!%p3808_p13, %s2589_s12), 31  ;;  %v2666_v6 = vor.u32 %v3288_v1, %v2665_v0  ;;  %v2641_v7 = vld [vmem:[%s4425_s1 + $0x20] sm:$0xf]  ;;  %v3283_v8 = vld [vmem:[%s4425_s1 + $0x2c] sm:$0xf0]  ;;  %v2670_v10 = vor.u32 %v3286_v2, %v2667_v3  ;;  %s3438_s15 = sshll.u32 %s3648_s22, 8 }
  0x28   : > { %v3281_v9 = vld [vmem:[%s4425_s1 + $0x24] sm:$0xf]  ;;  %v2643_v11 = vld [vmem:[%s4425_s1 + $0x30] sm:$0xf0]  ;;  %v2649_v12 = vld [vmem:[%s4425_s1 + $0x28] sm:$0xf]  ;;  %v2642_v16 = vor.u32 %v3283_v8, %v2641_v7  ;;  %s2504_s23 = scalar_lea.hbm %s4429_s5, %s3438_s15 }
  0x29   : > { %513 = vmatpush.bf16.msra.mxu0 %v2674_v56  ;;  %v3284_v13 = vld [vmem:[%s4425_s1 + $0x34] sm:$0xf0]  ;;  %v3282_v14 = vld [vmem:[%s4425_s1 + $0x2c] sm:$0xf]  ;;  %v2651_v15 = vld [vmem:[%s4425_s1 + $0x38] sm:$0xf0]  ;;  %v2646_v18 = vor.u32 %v3281_v9, %v2643_v11 }
  0x2a   : > { %562 = vmatpush.bf16.msra.mxu1 %v2678_v57  ;;  %v2625_v17 = vld [vmem:[%s4425_s1] sm:$0xf]  ;;  %s2590_s26 = sshll.u32 %s4453_s12, 2  ;;  %v2650_v19 = vor.u32 %v3284_v13, %v2649_v12  ;;  %v3279_v20 = vld [vmem:[%s4425_s1 + $0xc] sm:$0xf0]  ;;  %v2654_v23 = vor.u32 %v3282_v14, %v2651_v15  ;;  %s4177_s12 = scalar_lea.vmem [#allocation5], %s2588_s10 }
  0x2b   : > { %611 = vmatpush.bf16.msra.mxu2 %v2682_v58  ;;  %660 = vmatpush.bf16.msra.mxu3 %v2686_v62  ;;  %v3277_v21 = vld [vmem:[%s4425_s1 + $0x4] sm:$0xf]  ;;  %v2627_v22 = vld [vmem:[%s4425_s1 + $0x10] sm:$0xf0]  ;;  %v2633_v24 = vld [vmem:[%s4425_s1 + $0x8] sm:$0xf]  ;;  %v2626_v30 = vor.u32 %v3279_v20, %v2625_v17  ;;  %s3894_s6 = scalar_lea.vmem %s4424_s0, %s2590_s26 }
  0x2c   : > { %v3280_v25 = vld [vmem:[%s4425_s1 + $0x14] sm:$0xf0]  ;;  %v3278_v26 = vld [vmem:[%s4425_s1 + $0xc] sm:$0xf]  ;;  %v2635_v27 = vld [vmem:[%s4425_s1 + $0x18] sm:$0xf0]  ;;  %v2630_v33 = vor.u32 %v3277_v21, %v2627_v22 }
  0x2d   : > { %514 = vmatpush.bf16.msra.mxu0 %v2658_v4  ;;  %v3121_v28 = vld [vmem:[#allocation2 + $0x2e0] sm:$0xf]  ;;  %v3403_v29 = vld [vmem:[#allocation2 + $0x2ec] sm:$0xf0]  ;;  %v2634_v34 = vor.u32 %v3280_v25, %v2633_v24  ;;  %v2638_v35 = vor.u32 %v3278_v26, %v2635_v27  ;;  %v3270_v57 = vld [vmem:[%s3894_s6 + $0x8] sm:$0xff]  ;;  %s2505_s25 = sshll.u32 %s4177_s12, 4  ;;  %s2506_s25 = int_to_ptr.vmem [resolvable:$true] %s2505_s25 }
  0x2e   : > { %563 = vmatpush.bf16.msra.mxu1 %v2662_v5  ;;  %v3249_v31 = vld [vmem:[#allocation2 + $0x3e0] sm:$0xf]  ;;  %v3435_v32 = vld [vmem:[#allocation2 + $0x3ec] sm:$0xf0]  ;;  %v3122_v36 = vor.u32 %v3403_v29, %v3121_v28  ;;  %s2507_s30 = sshll.u32 %s2504_s23, 4  ;;  %s2492_s22 = scalar_lea.sflag [#allocation4], %s233_s9  ;;  %s2508_s30 = int_to_ptr.hbm [resolvable:$true] %s2507_s30 }
  0x2f   : > { %612 = vmatpush.bf16.msra.mxu2 %v2666_v6  ;;  %661 = vmatpush.bf16.msra.mxu3 %v2670_v10  ;;  %v2865_v37 = vld [vmem:[#allocation2 + $0xe0] sm:$0xf]  ;;  %v3339_v38 = vld [vmem:[#allocation2 + $0xec] sm:$0xf0]  ;;  %v3250_v40 = vor.u32 %v3435_v32, %v3249_v31  ;;  %s3544_s8 = scalar_lea.hbm %s4429_s5, 512 }
  0x30   : > { %v3269_v39 = vld [vmem:[%s3894_s6] sm:$0xff]  ;;  %v3371_v42 = vld [vmem:[#allocation2 + $0x1ec] sm:$0xf0]  ;;  %v2866_v43 = vor.u32 %v3339_v38, %v2865_v37 }
  0x31   : > { %515 = vmatpush.bf16.msra.mxu0 %v2642_v16  ;;  %v2993_v41 = vld [vmem:[#allocation2 + $0x1e0] sm:$0xf]  ;;  %v3399_v46 = vld [vmem:[#allocation2 + $0x2cc] sm:$0xf0] }
  0x32   : > { %564 = vmatpush.bf16.msra.mxu1 %v2646_v18  ;;  %v2994_v44 = vor.u32 %v3371_v42, %v2993_v41  ;;  %v3105_v45 = vld [vmem:[#allocation2 + $0x2c0] sm:$0xf]  ;;  %v3335_v49 = vld [vmem:[#allocation2 + $0xcc] sm:$0xf0] }
  0x33   : > { %613 = vmatpush.bf16.msra.mxu2 %v2650_v19  ;;  %662 = vmatpush.bf16.msra.mxu3 %v2654_v23  ;;  %v2849_v47 = vld [vmem:[#allocation2 + $0xc0] sm:$0xf]  ;;  %v3106_v48 = vor.u32 %v3399_v46, %v3105_v45  ;;  %v3431_v51 = vld [vmem:[#allocation2 + $0x3cc] sm:$0xf0]  ;;  %v3272_v19 = vld [vmem:[%s3894_s6 + $0x18] sm:$0xff] }
  0x34   : > { %v3233_v50 = vld [vmem:[#allocation2 + $0x3c0] sm:$0xf]  ;;  %v2850_v52 = vor.u32 %v3335_v49, %v2849_v47  ;;  %v3367_v55 = vld [vmem:[#allocation2 + $0x1cc] sm:$0xf0]  ;;  %v3274_v45 = vld [vmem:[%s3894_s6 + $0x28] sm:$0xff] }
  0x35   : > { %516 = vmatpush.bf16.msra.mxu0 %v2626_v30  ;;  %v3234_v53 = vor.u32 %v3431_v51, %v3233_v50  ;;  %v2977_v54 = vld [vmem:[#allocation2 + $0x1c0] sm:$0xf]  ;;  %v3395_v59 = vld [vmem:[#allocation2 + $0x2ac] sm:$0xf0] }
  0x36   : > { %565 = vmatpush.bf16.msra.mxu1 %v2630_v33  ;;  %v2978_v56 = vor.u32 %v3367_v55, %v2977_v54  ;;  %v3089_v58 = vld [vmem:[#allocation2 + $0x2a0] sm:$0xf]  ;;  %v3331_v62 = vld [vmem:[#allocation2 + $0xac] sm:$0xf0] }
  0x37   : > { %614 = vmatpush.bf16.msra.mxu2 %v2634_v34  ;;  %663 = vmatpush.bf16.msra.mxu3 %v2638_v35  ;;  %v2833_v60 = vld [vmem:[#allocation2 + $0xa0] sm:$0xf]  ;;  %v3090_v61 = vor.u32 %v3395_v59, %v3089_v58  ;;  %v3427_v0 = vld [vmem:[#allocation2 + $0x3ac] sm:$0xf0] }
  0x38   : > { %517 = vmatmul.bf16.vlgmr.msra.gmra.mxu0 %v3269_v39  ;;  %v3217_v63 = vld [vmem:[#allocation2 + $0x3a0] sm:$0xf]  ;;  %v2834_v1 = vor.u32 %v3331_v62, %v2833_v60  ;;  %v3363_v4 = vld [vmem:[#allocation2 + $0x1ac] sm:$0xf0] }
  0x39   : > { %566 = vmatmul.bf16.vlgmr.msra.gmra.mxu1 %v3269_v39  ;;  %1643 = vmatpush.bf16.msrb.mxu0 %v2866_v43  ;;  %v3218_v2 = vor.u32 %v3427_v0, %v3217_v63  ;;  %v2961_v3 = vld [vmem:[#allocation2 + $0x1a0] sm:$0xf]  ;;  %v3271_v6 = vld [vmem:[%s3894_s6 + $0x10] sm:$0xff] }
  0x3a   : > { %615 = vmatmul.bf16.vlgmr.msra.gmra.mxu2 %v3269_v39  ;;  %664 = vmatmul.bf16.vlgmr.msra.gmra.mxu3 %v3269_v39  ;;  %v2962_v5 = vor.u32 %v3363_v4, %v2961_v3  ;;  %v3073_v7 = vld [vmem:[#allocation2 + $0x280] sm:$0xf]  ;;  %v3391_v8 = vld [vmem:[#allocation2 + $0x28c] sm:$0xf0] }
  0x3b   : > { %1741 = vmatpush.bf16.msrb.mxu2 %v3122_v36  ;;  %1790 = vmatpush.bf16.msrb.mxu3 %v3250_v40  ;;  %v2817_v9 = vld [vmem:[#allocation2 + $0x80] sm:$0xf]  ;;  %v3074_v10 = vor.u32 %v3391_v8, %v3073_v7  ;;  %v3327_v11 = vld [vmem:[#allocation2 + $0x8c] sm:$0xf0] }
  0x3c   : > { %1692 = vmatpush.bf16.msrb.mxu1 %v2994_v44  ;;  %v3201_v12 = vld [vmem:[#allocation2 + $0x380] sm:$0xf]  ;;  %v3423_v13 = vld [vmem:[#allocation2 + $0x38c] sm:$0xf0]  ;;  %v2818_v14 = vor.u32 %v3327_v11, %v2817_v9  ;;  %v3401_v9 = vld [vmem:[#allocation2 + $0x2e4] sm:$0xf] }
  0x3d   : > { %1644 = vmatpush.bf16.msrb.mxu0 %v2850_v52  ;;  %v3202_v15 = vor.u32 %v3423_v13, %v3201_v12  ;;  %v2945_v16 = vld [vmem:[#allocation2 + $0x180] sm:$0xf]  ;;  %v3359_v17 = vld [vmem:[#allocation2 + $0x18c] sm:$0xf0] }
  0x3e   : > { %v2946_v18 = vor.u32 %v3359_v17, %v2945_v16  ;;  %v3057_v20 = vld [vmem:[#allocation2 + $0x260] sm:$0xf]  ;;  %v3387_v21 = vld [vmem:[#allocation2 + $0x26c] sm:$0xf0]  ;;  %v2867_v16 = vld [vmem:[#allocation2 + $0xf0] sm:$0xf0] }
  0x3f   : > { %1742 = vmatpush.bf16.msrb.mxu2 %v3106_v48  ;;  %1791 = vmatpush.bf16.msrb.mxu3 %v3234_v53  ;;  %v2801_v22 = vld [vmem:[#allocation2 + $0x60] sm:$0xf]  ;;  %v3058_v23 = vor.u32 %v3387_v21, %v3057_v20  ;;  %v3323_v24 = vld [vmem:[#allocation2 + $0x6c] sm:$0xf0]  ;;  %v3433_v17 = vld [vmem:[#allocation2 + $0x3e4] sm:$0xf] }
  0x40   : > { %1693 = vmatpush.bf16.msrb.mxu1 %v2978_v56  ;;  %v3185_v25 = vld [vmem:[#allocation2 + $0x360] sm:$0xf]  ;;  %v3419_v26 = vld [vmem:[#allocation2 + $0x36c] sm:$0xf0]  ;;  %v2802_v27 = vor.u32 %v3323_v24, %v2801_v22  ;;  %v3251_v20 = vld [vmem:[#allocation2 + $0x3f0] sm:$0xf0] }
  0x41   : > { %1645 = vmatpush.bf16.msrb.mxu0 %v2834_v1  ;;  %v3186_v28 = vor.u32 %v3419_v26, %v3185_v25  ;;  %v2929_v29 = vld [vmem:[#allocation2 + $0x160] sm:$0xf]  ;;  %v3355_v30 = vld [vmem:[#allocation2 + $0x16c] sm:$0xf0]  ;;  %v3369_v21 = vld [vmem:[#allocation2 + $0x1e4] sm:$0xf] }
  0x42   : > { %v2930_v31 = vor.u32 %v3355_v30, %v2929_v29  ;;  %v3273_v32 = vld [vmem:[%s3894_s6 + $0x20] sm:$0xff]  ;;  %v3383_v34 = vld [vmem:[#allocation2 + $0x24c] sm:$0xf0]  ;;  %v2995_v22 = vld [vmem:[#allocation2 + $0x1f0] sm:$0xf0] }
  0x43   : > { %1743 = vmatpush.bf16.msrb.mxu2 %v3090_v61  ;;  %1792 = vmatpush.bf16.msrb.mxu3 %v3218_v2  ;;  %v3041_v33 = vld [vmem:[#allocation2 + $0x240] sm:$0xf]  ;;  %v3319_v37 = vld [vmem:[#allocation2 + $0x4c] sm:$0xf0]  ;;  %v3276_v2 = vld [vmem:[%s3894_s6 + $0x38] sm:$0xff]  ;;  %v2998_v24 = vor.u32 %v3369_v21, %v2995_v22 }
  0x44   : > { %1694 = vmatpush.bf16.msrb.mxu1 %v2962_v5  ;;  %v2785_v35 = vld [vmem:[#allocation2 + $0x40] sm:$0xf]  ;;  %v3042_v36 = vor.u32 %v3383_v34, %v3041_v33  ;;  %v3415_v39 = vld [vmem:[#allocation2 + $0x34c] sm:$0xf0] }
  0x45   : > { %1646 = vmatpush.bf16.msrb.mxu0 %v2818_v14  ;;  %v3169_v38 = vld [vmem:[#allocation2 + $0x340] sm:$0xf]  ;;  %v2786_v40 = vor.u32 %v3319_v37, %v2785_v35  ;;  %v3351_v43 = vld [vmem:[#allocation2 + $0x14c] sm:$0xf0] }
  0x46   : > { %v3170_v41 = vor.u32 %v3415_v39, %v3169_v38  ;;  %v2913_v42 = vld [vmem:[#allocation2 + $0x140] sm:$0xf]  ;;  %v3379_v47 = vld [vmem:[#allocation2 + $0x22c] sm:$0xf0] }
  0x47   : > { %1744 = vmatpush.bf16.msrb.mxu2 %v3074_v10  ;;  %1793 = vmatpush.bf16.msrb.mxu3 %v3202_v15  ;;  %v2914_v44 = vor.u32 %v3351_v43, %v2913_v42  ;;  %v3025_v46 = vld [vmem:[#allocation2 + $0x220] sm:$0xf]  ;;  %v3315_v50 = vld [vmem:[#allocation2 + $0x2c] sm:$0xf0]  ;;  %v3123_v10 = vld [vmem:[#allocation2 + $0x2f0] sm:$0xf0] }
  0x48   : > { %522 = vmatmul.bf16.gmra.mxu0 %v3270_v57  ;;  %1695 = vmatpush.bf16.msrb.mxu1 %v2946_v18  ;;  %v2769_v48 = vld [vmem:[#allocation2 + $0x20] sm:$0xf]  ;;  %v3026_v49 = vor.u32 %v3379_v47, %v3025_v46  ;;  %v3411_v52 = vld [vmem:[#allocation2 + $0x32c] sm:$0xf0]  ;;  %v3126_v11 = vor.u32 %v3401_v9, %v3123_v10  ;;  %v3337_v15 = vld [vmem:[#allocation2 + $0xe4] sm:$0xf] }
  0x49   : > { %571 = vmatmul.bf16.gmra.mxu1 %v3270_v57  ;;  %1647 = vmatpush.bf16.msrb.mxu0 %v2802_v27  ;;  %v3153_v51 = vld [vmem:[#allocation2 + $0x320] sm:$0xf]  ;;  %v2770_v53 = vor.u32 %v3315_v50, %v2769_v48  ;;  %v3347_v56 = vld [vmem:[#allocation2 + $0x12c] sm:$0xf0] }
  0x4a   : > { %620 = vmatmul.bf16.gmra.mxu2 %v3270_v57  ;;  %669 = vmatmul.bf16.gmra.mxu3 %v3270_v57  ;;  %v3154_v54 = vor.u32 %v3411_v52, %v3153_v51  ;;  %v2897_v55 = vld [vmem:[#allocation2 + $0x120] sm:$0xf]  ;;  %v3275_v58 = vld [vmem:[%s3894_s6 + $0x30] sm:$0xff]  ;;  %s3538_s6 = sshra.s32 %s2508_s30, 4  ;;  %s3539_s6 = int_to_ptr.hbm [resolvable:$true] %s3538_s6 }
  0x4b   : > { %1745 = vmatpush.bf16.msrb.mxu2 %v3058_v23  ;;  %1794 = vmatpush.bf16.msrb.mxu3 %v3186_v28  ;;  %v2898_v57 = vor.u32 %v3347_v56, %v2897_v55  ;;  %v3009_v59 = vld [vmem:[#allocation2 + $0x200] sm:$0xf]  ;;  %v3375_v60 = vld [vmem:[#allocation2 + $0x20c] sm:$0xf0]  ;;  %v3254_v23 = vor.u32 %v3433_v17, %v3251_v20  ;;  %v3333_v56 = vld [vmem:[#allocation2 + $0xc4] sm:$0xf]  ;;  %p3545_p3 = scmp.lt.s32.totalorder %s3539_s6, %s4429_s5 }
  0x4c   : > { %1696 = vmatpush.bf16.msrb.mxu1 %v2930_v31  ;;  %v2753_v61 = vld [vmem:[#allocation2] sm:$0xf]  ;;  %v3010_v62 = vor.u32 %v3375_v60, %v3009_v59  ;;  %v3311_v63 = vld [vmem:[#allocation2 + $0xc] sm:$0xf0]  ;;  %s3540_s26 = scalar_lea.hbm %s3539_s6, 256 }
  0x4d   : > { %1648 = vmatpush.bf16.msrb.mxu0 %v2786_v40  ;;  %v2881_v0 = vld [vmem:[#allocation2 + $0x100] sm:$0xf]  ;;  %v3343_v1 = vld [vmem:[#allocation2 + $0x10c] sm:$0xf0]  ;;  %v2754_v3 = vor.u32 %v3311_v63, %v2753_v61  ;;  %v3365_v63 = vld [vmem:[#allocation2 + $0x1c4] sm:$0xf]  ;;  %p3541_p0 = scmp.ne.s32.totalorder %s3539_s6, %s3540_s26  ;;  %p3546_p4 = scmp.lt.s32.totalorder %s3544_s8, %s3540_s26 }
  0x4e   : > { %v2882_v4 = vor.u32 %v3343_v1, %v2881_v0  ;;  %v3137_v5 = vld [vmem:[#allocation2 + $0x300] sm:$0xf]  ;;  %v2979_v0 = vld [vmem:[#allocation2 + $0x1d0] sm:$0xf0] }
  0x4f   : > { %1746 = vmatpush.bf16.msrb.mxu2 %v3042_v36  ;;  %1795 = vmatpush.bf16.msrb.mxu3 %v3170_v41  ;;  %v291_v8 = vld [vmem:[%s4426_s2] sm:$0xf]  ;;  %p3542_p1 = pnand %p3541_p0, %p3665_p5  ;;  %p3547_p7 = por %p3546_p4, %p3545_p3 }
  0x50   : > { %1697 = vmatpush.bf16.msrb.mxu1 %v2914_v44  ;;  %v3907_v12 = vperm.slane %v291_v8, 0  ;;  %v3909_v13 = vperm.slane %v291_v8, 1  ;;  %v3913_v27 = vperm.slane %v291_v8, 2  ;;  %v3915_v29 = vperm.slane %v291_v8, 3  ;;  %v3397_v44 = vld [vmem:[#allocation2 + $0x2c4] sm:$0xf] }
  0x51   : > { %1649 = vmatpush.bf16.msrb.mxu0 %v2770_v53  ;;  %p3543_p2 = pneg %p3542_p1 }
  0x53   : > { %1747 = vmatpush.bf16.msrb.mxu2 %v3026_v49  ;;  %1796 = vmatpush.bf16.msrb.mxu3 %v3154_v54  ;;  %p3548_p8 = pnand %p3547_p7, %p3543_p2 }
  0x54   : > { %1698 = vmatpush.bf16.msrb.mxu1 %v2898_v57  ;;  %v2851_v57 = vld [vmem:[#allocation2 + $0xd0] sm:$0xf0] }
  0x55   : > { %1650 = vmatpush.bf16.msrb.mxu0 %v2754_v3  ;;  %v2854_v61 = vor.u32 %v3333_v56, %v2851_v57  ;;  %v2982_v3 = vor.u32 %v3365_v63, %v2979_v0 }
  0x57   : > { %1748 = vmatpush.bf16.msrb.mxu2 %v3010_v62  ;;  %v3235_v62 = vld [vmem:[#allocation2 + $0x3d0] sm:$0xf0] }
  0x58   : > { %527 = vmatmul.bf16.gmra.mxu0 %v3271_v6  ;;  %1699 = vmatpush.bf16.msrb.mxu1 %v2882_v4 }
  0x59   : > { %576 = vmatmul.bf16.gmra.mxu1 %v3271_v6 }
  0x5a   : > { %625 = vmatmul.bf16.gmra.mxu2 %v3271_v6  ;;  %674 = vmatmul.bf16.gmra.mxu3 %v3271_v6  ;;  %v3407_v6 = vld [vmem:[#allocation2 + $0x30c] sm:$0xf0] }
  0x5b   : > { %v3138_v7 = vor.u32 %v3407_v6, %v3137_v5  ;;  %1937 = vmatpush.bf16.msra.mxu2 %v3126_v11 }
  0x5c   : > { %1888 = vmatpush.bf16.msra.mxu1 %v2998_v24 }
  0x5d   : > { %1797 = vmatpush.bf16.msrb.mxu3 %v3138_v7 }
  0x60   : > { %1889 = vmatpush.bf16.msra.mxu1 %v2982_v3 }
  0x61   : > { %1986 = vmatpush.bf16.msra.mxu3 %v3254_v23 }
  0x68   : > { %532 = vmatmul.bf16.gmra.mxu0 %v3272_v19 }
  0x69   : > { %581 = vmatmul.bf16.gmra.mxu1 %v3272_v19 }
  0x6a   : > { %630 = vmatmul.bf16.gmra.mxu2 %v3272_v19  ;;  %679 = vmatmul.bf16.gmra.mxu3 %v3272_v19  ;;  %v2870_v19 = vor.u32 %v3337_v15, %v2867_v16 }
  0x6c   : > { %1839 = vmatpush.bf16.msra.mxu0 %v2870_v19 }
  0x70   : > { %1840 = vmatpush.bf16.msra.mxu0 %v2854_v61 }
  0x78   : > { %537 = vmatmul.bf16.gmra.mxu0 %v3273_v32 }
  0x79   : > { %586 = vmatmul.bf16.gmra.mxu1 %v3273_v32 }
  0x7a   : > { %635 = vmatmul.bf16.gmra.mxu2 %v3273_v32  ;;  %684 = vmatmul.bf16.gmra.mxu3 %v3273_v32 }
  0x88   : > { %542 = vmatmul.bf16.gmra.mxu0 %v3274_v45 }
  0x89   : > { %591 = vmatmul.bf16.gmra.mxu1 %v3274_v45 }
  0x8a   : > { %640 = vmatmul.bf16.gmra.mxu2 %v3274_v45  ;;  %689 = vmatmul.bf16.gmra.mxu3 %v3274_v45  ;;  %v3107_v45 = vld [vmem:[#allocation2 + $0x2d0] sm:$0xf0] }
  0x8b   : > { %v3110_v47 = vor.u32 %v3397_v44, %v3107_v45  ;;  %v3329_v44 = vld [vmem:[#allocation2 + $0xa4] sm:$0xf]  ;;  %v2835_v45 = vld [vmem:[#allocation2 + $0xb0] sm:$0xf0] }
  0x8d   : > { %1938 = vmatpush.bf16.msra.mxu2 %v3110_v47 }
  0x98   : > { %547 = vmatmul.bf16.gmra.mxu0 %v3275_v58 }
  0x99   : > { %596 = vmatmul.bf16.gmra.mxu1 %v3275_v58 }
  0x9a   : > { %645 = vmatmul.bf16.gmra.mxu2 %v3275_v58  ;;  %694 = vmatmul.bf16.gmra.mxu3 %v3275_v58  ;;  %v3429_v58 = vld [vmem:[#allocation2 + $0x3c4] sm:$0xf] }
  0xa8   : > { %552 = vmatmul.bf16.gmra.mxu0 %v3276_v2 }
  0xa9   : > { %601 = vmatmul.bf16.gmra.mxu1 %v3276_v2 }
  0xaa   : > { %650 = vmatmul.bf16.gmra.mxu2 %v3276_v2  ;;  %699 = vmatmul.bf16.gmra.mxu3 %v3276_v2  ;;  %v3238_v2 = vor.u32 %v3429_v58, %v3235_v62 }
  0xac   : > { %1987 = vmatpush.bf16.msra.mxu3 %v3238_v2 }
  0xb5   : > { %v518_v14 = vpop.f32.mrf.mxu0 }
  0xb6   : > { %v567_v18 = vpop.f32.mrf.mxu1  ;;  %v519_v26 = vadd.f32 %v518_v14, %v3907_v12 }
  0xb7   : > { %v568_v25 = vadd.f32 %v567_v18, %v3909_v13 }
  0xb8   : > { %v705_v33 = vmul.f32 0.2, %v519_v26 }
  0xb9   : > { %v706_v30 = vmul.f32 0.2, %v568_v25 }
  0xba   : > { %v769_v42 = vmax.f32 %v519_v26, %v705_v33  ;;  %v3091_v33 = vld [vmem:[#allocation2 + $0x2b0] sm:$0xf0] }
  0xbb   : > { %v770_v40 = vmax.f32 %v568_v25, %v706_v30 }
  0xbd   : > { %v616_v28 = vpop.f32.mrf.mxu2  ;;  %v665_v31 = vpop.f32.mrf.mxu3 }
  0xbe   : > { %v520_v32 = vpop.f32.mrf.mxu0  ;;  %v569_v35 = vpop.f32.mrf.mxu1  ;;  %v617_v37 = vadd.f32 %v616_v28, %v3913_v27  ;;  %v666_v38 = vadd.f32 %v665_v31, %v3915_v29 }
  0xbf   : > { %v521_v34 = vadd.f32 %v520_v32, %v3907_v12  ;;  %v570_v36 = vadd.f32 %v569_v35, %v3909_v13  ;;  %v3393_v32 = vld [vmem:[#allocation2 + $0x2a4] sm:$0xf] }
  0xc0   : > { %v707_v48 = vmul.f32 0.2, %v617_v37  ;;  %v708_v49 = vmul.f32 0.2, %v666_v38  ;;  %v3094_v35 = vor.u32 %v3393_v32, %v3091_v33 }
  0xc1   : > { %v709_v39 = vmul.f32 0.2, %v521_v34  ;;  %v710_v41 = vmul.f32 0.2, %v570_v36 }
  0xc2   : > { %v771_v5 = vmax.f32 %v617_v37, %v707_v48  ;;  %v772_v8 = vmax.f32 %v666_v38, %v708_v49  ;;  %1939 = vmatpush.bf16.msra.mxu2 %v3094_v35  ;;  %v2838_v49 = vor.u32 %v3329_v44, %v2835_v45  ;;  %v3203_v44 = vld [vmem:[#allocation2 + $0x390] sm:$0xf0]  ;;  %v3357_v45 = vld [vmem:[#allocation2 + $0x184] sm:$0xf] }
  0xc3   : > { %v773_v43 = vmax.f32 %v521_v34, %v709_v39  ;;  %v774_v46 = vmax.f32 %v570_v36, %v710_v41 }
  0xc4   : > { %1841 = vmatpush.bf16.msra.mxu0 %v2838_v49 }
  0xc5   : > { %v3921_v50 = vpack.c.bf16 %v773_v43, %v769_v42  ;;  %v618_v51 = vpop.f32.mrf.mxu2  ;;  %v3923_v52 = vpack.c.bf16 %v774_v46, %v770_v40  ;;  %v667_v54 = vpop.f32.mrf.mxu3  ;;  %v3425_v46 = vld [vmem:[#allocation2 + $0x3a4] sm:$0xf] }
  0xc6   : > { %v619_v53 = vadd.f32 %v618_v51, %v3913_v27  ;;  %v523_v55 = vpop.f32.mrf.mxu0  ;;  %v668_v59 = vadd.f32 %v667_v54, %v3915_v29  ;;  %v572_v60 = vpop.f32.mrf.mxu1  ;;  %v3219_v51 = vld [vmem:[#allocation2 + $0x3b0] sm:$0xf0] }
  0xc7   : > { %4438 = vst [vmem:[#allocation8_spill] sm:$0xff] %v3923_v52  ;;  %1651 = vmatmul.bf16.vlgmr.msrb.gmra.mxu0 %v3921_v50  ;;  %1700 = vmatmul.bf16.vlgmr.msrb.gmra.mxu1 %v3923_v52  ;;  %v573_v7 = vadd.f32 %v572_v60, %v3909_v13  ;;  %v524_v10 = vadd.f32 %v523_v55, %v3907_v12  ;;  %v2963_v54 = vld [vmem:[#allocation2 + $0x1b0] sm:$0xf0] }
  0xc8   : > { %v711_v1 = vmul.f32 0.2, %v619_v53  ;;  %v712_v4 = vmul.f32 0.2, %v668_v59  ;;  %v3222_v56 = vor.u32 %v3425_v46, %v3219_v51  ;;  %v2947_v46 = vld [vmem:[#allocation2 + $0x190] sm:$0xf0] }
  0xc9   : > { %v714_v16 = vmul.f32 0.2, %v573_v7  ;;  %v713_v19 = vmul.f32 0.2, %v524_v10  ;;  %v2950_v49 = vor.u32 %v3357_v45, %v2947_v46 }
  0xca   : > { %v775_v6 = vmax.f32 %v619_v53, %v711_v1  ;;  %v776_v9 = vmax.f32 %v668_v59, %v712_v4  ;;  %v3361_v53 = vld [vmem:[#allocation2 + $0x1a4] sm:$0xf]  ;;  %1988 = vmatpush.bf16.msra.mxu3 %v3222_v56 }
  0xcb   : > { %v778_v26 = vmax.f32 %v573_v7, %v714_v16  ;;  %v777_v30 = vmax.f32 %v524_v10, %v713_v19  ;;  %v2966_v57 = vor.u32 %v3361_v53, %v2963_v54 }
  0xcc   : > { %v3931_v11 = vpack.c.bf16 %v775_v6, %v771_v5  ;;  %v3933_v14 = vpack.c.bf16 %v776_v9, %v772_v8 }
  0xcd   : > { %v621_v15 = vpop.f32.mrf.mxu2  ;;  %v670_v17 = vpop.f32.mrf.mxu3  ;;  %1890 = vmatpush.bf16.msra.mxu1 %v2966_v57 }
  0xce   : > { %4439 = vst [vmem:[#allocation9_spill] sm:$0xff] %v3931_v11  ;;  %1749 = vmatmul.bf16.vlgmr.msrb.gmra.mxu2 %v3931_v11  ;;  %v525_v18 = vpop.f32.mrf.mxu0  ;;  %1798 = vmatmul.bf16.vlgmr.msrb.gmra.mxu3 %v3933_v14  ;;  %v574_v21 = vpop.f32.mrf.mxu1  ;;  %v622_v23 = vadd.f32 %v621_v15, %v3913_v27  ;;  %v671_v24 = vadd.f32 %v670_v17, %v3915_v29 }
  0xcf   : > { %4440 = vst [vmem:[#allocation10_spill] sm:$0xff] %v3933_v14  ;;  %v526_v20 = vadd.f32 %v525_v18, %v3907_v12  ;;  %v575_v22 = vadd.f32 %v574_v21, %v3909_v13 }
  0xd0   : > { %v715_v36 = vmul.f32 0.2, %v622_v23  ;;  %v716_v37 = vmul.f32 0.2, %v671_v24 }
  0xd1   : > { %v717_v25 = vmul.f32 0.2, %v526_v20  ;;  %v718_v28 = vmul.f32 0.2, %v575_v22  ;;  %1891 = vmatpush.bf16.msra.mxu1 %v2950_v49 }
  0xd2   : > { %v779_v59 = vmax.f32 %v622_v23, %v715_v36  ;;  %v780_v62 = vmax.f32 %v671_v24, %v716_v37  ;;  %v3075_v23 = vld [vmem:[#allocation2 + $0x290] sm:$0xf0]  ;;  %v3325_v36 = vld [vmem:[#allocation2 + $0x84] sm:$0xf] }
  0xd3   : > { %v781_v31 = vmax.f32 %v526_v20, %v717_v25  ;;  %v782_v34 = vmax.f32 %v575_v22, %v718_v28  ;;  %v3389_v22 = vld [vmem:[#allocation2 + $0x284] sm:$0xf]  ;;  %v2819_v37 = vld [vmem:[#allocation2 + $0x90] sm:$0xf0] }
  0xd4   : > { %v3078_v25 = vor.u32 %v3389_v22, %v3075_v23 }
  0xd5   : > { %v3941_v38 = vpack.c.bf16 %v781_v31, %v777_v30  ;;  %v623_v39 = vpop.f32.mrf.mxu2  ;;  %v3943_v40 = vpack.c.bf16 %v782_v34, %v778_v26  ;;  %v672_v42 = vpop.f32.mrf.mxu3 }
  0xd6   : > { %v624_v41 = vadd.f32 %v623_v39, %v3913_v27  ;;  %v528_v43 = vpop.f32.mrf.mxu0  ;;  %v673_v47 = vadd.f32 %v672_v42, %v3915_v29  ;;  %v577_v48 = vpop.f32.mrf.mxu1  ;;  %1940 = vmatpush.bf16.msra.mxu2 %v3078_v25  ;;  %v3421_v39 = vld [vmem:[#allocation2 + $0x384] sm:$0xf] }
  0xd7   : > { %1656 = vmatmul.bf16.gmra.mxu0 %v3941_v38  ;;  %1705 = vmatmul.bf16.gmra.mxu1 %v3943_v40  ;;  %v578_v61 = vadd.f32 %v577_v48, %v3909_v13  ;;  %v529_v0 = vadd.f32 %v528_v43, %v3907_v12  ;;  %v2822_v43 = vor.u32 %v3325_v36, %v2819_v37  ;;  %v3417_v36 = vld [vmem:[#allocation2 + $0x364] sm:$0xf] }
  0xd8   : > { %v719_v55 = vmul.f32 0.2, %v624_v41  ;;  %v720_v58 = vmul.f32 0.2, %v673_v47  ;;  %v3206_v48 = vor.u32 %v3421_v39, %v3203_v44  ;;  %v2931_v44 = vld [vmem:[#allocation2 + $0x170] sm:$0xf0] }
  0xd9   : > { %v722_v4 = vmul.f32 0.2, %v578_v61  ;;  %v721_v7 = vmul.f32 0.2, %v529_v0  ;;  %1842 = vmatpush.bf16.msra.mxu0 %v2822_v43  ;;  %v3353_v43 = vld [vmem:[#allocation2 + $0x164] sm:$0xf] }
  0xda   : > { %v783_v60 = vmax.f32 %v624_v41, %v719_v55  ;;  %v784_v63 = vmax.f32 %v673_v47, %v720_v58  ;;  %1989 = vmatpush.bf16.msra.mxu3 %v3206_v48 }
  0xdb   : > { %v786_v18 = vmax.f32 %v578_v61, %v722_v4  ;;  %v785_v20 = vmax.f32 %v529_v0, %v721_v7 }
  0xdc   : > { %v3951_v1 = vpack.c.bf16 %v783_v60, %v779_v59  ;;  %v3953_v2 = vpack.c.bf16 %v784_v63, %v780_v62 }
  0xdd   : > { %v626_v3 = vpop.f32.mrf.mxu2  ;;  %v675_v5 = vpop.f32.mrf.mxu3 }
  0xde   : > { %1754 = vmatmul.bf16.gmra.mxu2 %v3951_v1  ;;  %v530_v6 = vpop.f32.mrf.mxu0  ;;  %1803 = vmatmul.bf16.gmra.mxu3 %v3953_v2  ;;  %v579_v9 = vpop.f32.mrf.mxu1  ;;  %v627_v15 = vadd.f32 %v626_v3, %v3913_v27  ;;  %v676_v16 = vadd.f32 %v675_v5, %v3915_v29 }
  0xdf   : > { %v531_v8 = vadd.f32 %v530_v6, %v3907_v12  ;;  %v580_v10 = vadd.f32 %v579_v9, %v3909_v13 }
  0xe0   : > { %v723_v26 = vmul.f32 0.2, %v627_v15  ;;  %v724_v28 = vmul.f32 0.2, %v676_v16 }
  0xe1   : > { %v725_v17 = vmul.f32 0.2, %v531_v8  ;;  %v726_v19 = vmul.f32 0.2, %v580_v10 }
  0xe2   : > { %v787_v53 = vmax.f32 %v627_v15, %v723_v26  ;;  %v788_v56 = vmax.f32 %v676_v16, %v724_v28 }
  0xe3   : > { %v789_v21 = vmax.f32 %v531_v8, %v725_v17  ;;  %v790_v24 = vmax.f32 %v580_v10, %v726_v19  ;;  %v3059_v19 = vld [vmem:[#allocation2 + $0x270] sm:$0xf0] }
  0xe5   : > { %v3961_v30 = vpack.c.bf16 %v789_v21, %v785_v20  ;;  %v628_v31 = vpop.f32.mrf.mxu2  ;;  %v3963_v32 = vpack.c.bf16 %v790_v24, %v786_v18  ;;  %v677_v34 = vpop.f32.mrf.mxu3  ;;  %v3385_v18 = vld [vmem:[#allocation2 + $0x264] sm:$0xf] }
  0xe6   : > { %v629_v33 = vadd.f32 %v628_v31, %v3913_v27  ;;  %v533_v35 = vpop.f32.mrf.mxu0  ;;  %v678_v41 = vadd.f32 %v677_v34, %v3915_v29  ;;  %v582_v42 = vpop.f32.mrf.mxu1  ;;  %v3062_v21 = vor.u32 %v3385_v18, %v3059_v19  ;;  %v3321_v34 = vld [vmem:[#allocation2 + $0x64] sm:$0xf]  ;;  %v3043_v19 = vld [vmem:[#allocation2 + $0x250] sm:$0xf0] }
  0xe7   : > { %1661 = vmatmul.bf16.gmra.mxu0 %v3961_v30  ;;  %1710 = vmatmul.bf16.gmra.mxu1 %v3963_v32  ;;  %v583_v55 = vadd.f32 %v582_v42, %v3909_v13  ;;  %v534_v58 = vadd.f32 %v533_v35, %v3907_v12  ;;  %v2803_v35 = vld [vmem:[#allocation2 + $0x70] sm:$0xf0]  ;;  %v3381_v18 = vld [vmem:[#allocation2 + $0x244] sm:$0xf] }
  0xe8   : > { %v727_v47 = vmul.f32 0.2, %v629_v33  ;;  %v728_v51 = vmul.f32 0.2, %v678_v41  ;;  %1941 = vmatpush.bf16.msra.mxu2 %v3062_v21  ;;  %v3187_v42 = vld [vmem:[#allocation2 + $0x370] sm:$0xf0]  ;;  %v3046_v21 = vor.u32 %v3381_v18, %v3043_v19 }
  0xe9   : > { %v730_v62 = vmul.f32 0.2, %v583_v55  ;;  %v729_v3 = vmul.f32 0.2, %v534_v58  ;;  %v3190_v46 = vor.u32 %v3417_v36, %v3187_v42  ;;  %v3317_v36 = vld [vmem:[#allocation2 + $0x44] sm:$0xf] }
  0xea   : > { %v791_v54 = vmax.f32 %v629_v33, %v727_v47  ;;  %v792_v57 = vmax.f32 %v678_v41, %v728_v51  ;;  %v2806_v41 = vor.u32 %v3321_v34, %v2803_v35  ;;  %v2934_v47 = vor.u32 %v3353_v43, %v2931_v44  ;;  %v3171_v44 = vld [vmem:[#allocation2 + $0x350] sm:$0xf0] }
  0xeb   : > { %v794_v10 = vmax.f32 %v583_v55, %v730_v62  ;;  %v793_v16 = vmax.f32 %v534_v58, %v729_v3  ;;  %1990 = vmatpush.bf16.msra.mxu3 %v3190_v46  ;;  %v2915_v46 = vld [vmem:[#allocation2 + $0x150] sm:$0xf0] }
  0xec   : > { %v3971_v59 = vpack.c.bf16 %v791_v54, %v787_v53  ;;  %v3973_v60 = vpack.c.bf16 %v792_v57, %v788_v56  ;;  %1843 = vmatpush.bf16.msra.mxu0 %v2806_v41  ;;  %1892 = vmatpush.bf16.msra.mxu1 %v2934_v47 }
  0xed   : > { %v631_v61 = vpop.f32.mrf.mxu2  ;;  %v680_v63 = vpop.f32.mrf.mxu3  ;;  %1942 = vmatpush.bf16.msra.mxu2 %v3046_v21 }
  0xee   : > { %1759 = vmatmul.bf16.gmra.mxu2 %v3971_v59  ;;  %v535_v0 = vpop.f32.mrf.mxu0  ;;  %1808 = vmatmul.bf16.gmra.mxu3 %v3973_v60  ;;  %v584_v5 = vpop.f32.mrf.mxu1  ;;  %v632_v7 = vadd.f32 %v631_v61, %v3913_v27  ;;  %v681_v8 = vadd.f32 %v680_v63, %v3915_v29 }
  0xef   : > { %v536_v4 = vadd.f32 %v535_v0, %v3907_v12  ;;  %v585_v6 = vadd.f32 %v584_v5, %v3909_v13 }
  0xf0   : > { %v731_v22 = vmul.f32 0.2, %v632_v7  ;;  %v732_v23 = vmul.f32 0.2, %v681_v8 }
  0xf1   : > { %v733_v9 = vmul.f32 0.2, %v536_v4  ;;  %v734_v15 = vmul.f32 0.2, %v585_v6 }
  0xf2   : > { %v795_v49 = vmax.f32 %v632_v7, %v731_v22  ;;  %v796_v54 = vmax.f32 %v681_v8, %v732_v23 }
  0xf3   : > { %v797_v17 = vmax.f32 %v536_v4, %v733_v9  ;;  %v798_v20 = vmax.f32 %v585_v6, %v734_v15 }
  0xf5   : > { %v3981_v24 = vpack.c.bf16 %v797_v17, %v793_v16  ;;  %v633_v25 = vpop.f32.mrf.mxu2  ;;  %v3983_v26 = vpack.c.bf16 %v798_v20, %v794_v10  ;;  %v682_v31 = vpop.f32.mrf.mxu3 }
  0xf6   : > { %v634_v28 = vadd.f32 %v633_v25, %v3913_v27  ;;  %v538_v33 = vpop.f32.mrf.mxu0  ;;  %v683_v37 = vadd.f32 %v682_v31, %v3915_v29  ;;  %v587_v39 = vpop.f32.mrf.mxu1 }
  0xf7   : > { %1666 = vmatmul.bf16.gmra.mxu0 %v3981_v24  ;;  %1715 = vmatmul.bf16.gmra.mxu1 %v3983_v26  ;;  %v588_v53 = vadd.f32 %v587_v39, %v3909_v13  ;;  %v539_v56 = vadd.f32 %v538_v33, %v3907_v12  ;;  %v3413_v39 = vld [vmem:[#allocation2 + $0x344] sm:$0xf] }
  0xf8   : > { %v735_v45 = vmul.f32 0.2, %v634_v28  ;;  %v736_v48 = vmul.f32 0.2, %v683_v37 }
  0xf9   : > { %v738_v62 = vmul.f32 0.2, %v588_v53  ;;  %v737_v3 = vmul.f32 0.2, %v539_v56 }
  0xfa   : > { %v799_v51 = vmax.f32 %v634_v28, %v735_v45  ;;  %v800_v55 = vmax.f32 %v683_v37, %v736_v48  ;;  %v2787_v37 = vld [vmem:[#allocation2 + $0x50] sm:$0xf0]  ;;  %v3349_v45 = vld [vmem:[#allocation2 + $0x144] sm:$0xf]  ;;  %v3174_v48 = vor.u32 %v3413_v39, %v3171_v44 }
  0xfb   : > { %v802_v10 = vmax.f32 %v588_v53, %v738_v62  ;;  %v801_v16 = vmax.f32 %v539_v56, %v737_v3  ;;  %v2790_v43 = vor.u32 %v3317_v36, %v2787_v37  ;;  %v3313_v44 = vld [vmem:[#allocation2 + $0x24] sm:$0xf] }
  0xfc   : > { %v3991_v57 = vpack.c.bf16 %v799_v51, %v795_v49  ;;  %v3993_v58 = vpack.c.bf16 %v800_v55, %v796_v54  ;;  %v2918_v49 = vor.u32 %v3349_v45, %v2915_v46  ;;  %1991 = vmatpush.bf16.msra.mxu3 %v3174_v48  ;;  %v2771_v45 = vld [vmem:[#allocation2 + $0x30] sm:$0xf0]  ;;  %v3409_v46 = vld [vmem:[#allocation2 + $0x324] sm:$0xf] }
  0xfd   : > { %v636_v61 = vpop.f32.mrf.mxu2  ;;  %v685_v63 = vpop.f32.mrf.mxu3  ;;  %1844 = vmatpush.bf16.msra.mxu0 %v2790_v43 }
  0xfe   : > { %1764 = vmatmul.bf16.gmra.mxu2 %v3991_v57  ;;  %v540_v0 = vpop.f32.mrf.mxu0  ;;  %1813 = vmatmul.bf16.gmra.mxu3 %v3993_v58  ;;  %v589_v5 = vpop.f32.mrf.mxu1  ;;  %v637_v7 = vadd.f32 %v636_v61, %v3913_v27  ;;  %v686_v8 = vadd.f32 %v685_v63, %v3915_v29 }
  0xff   : > { %v541_v4 = vadd.f32 %v540_v0, %v3907_v12  ;;  %v590_v6 = vadd.f32 %v589_v5, %v3909_v13  ;;  %1893 = vmatpush.bf16.msra.mxu1 %v2918_v49  ;;  %v2774_v49 = vor.u32 %v3313_v44, %v2771_v45 }
 0x100   : > { %v739_v22 = vmul.f32 0.2, %v637_v7  ;;  %v740_v23 = vmul.f32 0.2, %v686_v8 }
 0x101   : > { %v741_v9 = vmul.f32 0.2, %v541_v4  ;;  %v742_v15 = vmul.f32 0.2, %v590_v6  ;;  %1845 = vmatpush.bf16.msra.mxu0 %v2774_v49  ;;  %v2883_v49 = vld [vmem:[#allocation2 + $0x110] sm:$0xf0] }
 0x102   : > { %v803_v53 = vmax.f32 %v637_v7, %v739_v22  ;;  %v804_v56 = vmax.f32 %v686_v8, %v740_v23  ;;  %v3377_v22 = vld [vmem:[#allocation2 + $0x224] sm:$0xf]  ;;  %v3027_v23 = vld [vmem:[#allocation2 + $0x230] sm:$0xf0] }
 0x103   : > { %v805_v17 = vmax.f32 %v541_v4, %v741_v9  ;;  %v806_v20 = vmax.f32 %v590_v6, %v742_v15 }
 0x105   : > { %v4001_v25 = vpack.c.bf16 %v805_v17, %v801_v16  ;;  %v638_v28 = vpop.f32.mrf.mxu2  ;;  %v4003_v31 = vpack.c.bf16 %v806_v20, %v802_v10  ;;  %v687_v34 = vpop.f32.mrf.mxu3 }
 0x106   : > { %v639_v33 = vadd.f32 %v638_v28, %v3913_v27  ;;  %v543_v35 = vpop.f32.mrf.mxu0  ;;  %v688_v41 = vadd.f32 %v687_v34, %v3915_v29  ;;  %v592_v42 = vpop.f32.mrf.mxu1 }
 0x107   : > { %1671 = vmatmul.bf16.gmra.mxu0 %v4001_v25  ;;  %1720 = vmatmul.bf16.gmra.mxu1 %v4003_v31  ;;  %v593_v55 = vadd.f32 %v592_v42, %v3909_v13  ;;  %v544_v62 = vadd.f32 %v543_v35, %v3907_v12 }
 0x108   : > { %v743_v47 = vmul.f32 0.2, %v639_v33  ;;  %v744_v51 = vmul.f32 0.2, %v688_v41 }
 0x109   : > { %v746_v4 = vmul.f32 0.2, %v593_v55  ;;  %v745_v7 = vmul.f32 0.2, %v544_v62 }
 0x10a   : > { %v807_v54 = vmax.f32 %v639_v33, %v743_v47  ;;  %v808_v61 = vmax.f32 %v688_v41, %v744_v51  ;;  %v3030_v33 = vor.u32 %v3377_v22, %v3027_v23  ;;  %v3155_v51 = vld [vmem:[#allocation2 + $0x330] sm:$0xf0]  ;;  %v3373_v23 = vld [vmem:[#allocation2 + $0x204] sm:$0xf] }
 0x10b   : > { %v810_v18 = vmax.f32 %v593_v55, %v746_v4  ;;  %v809_v20 = vmax.f32 %v544_v62, %v745_v7 }
 0x10c   : > { %v4011_v63 = vpack.c.bf16 %v807_v54, %v803_v53  ;;  %v4013_v0 = vpack.c.bf16 %v808_v61, %v804_v56  ;;  %1943 = vmatpush.bf16.msra.mxu2 %v3030_v33  ;;  %v3345_v53 = vld [vmem:[#allocation2 + $0x124] sm:$0xf]  ;;  %v2899_v54 = vld [vmem:[#allocation2 + $0x130] sm:$0xf0]  ;;  %v3158_v56 = vor.u32 %v3409_v46, %v3155_v51 }
 0x10d   : > { %v641_v3 = vpop.f32.mrf.mxu2  ;;  %v690_v5 = vpop.f32.mrf.mxu3  ;;  %v2902_v61 = vor.u32 %v3345_v53, %v2899_v54 }
 0x10e   : > { %1769 = vmatmul.bf16.gmra.mxu2 %v4011_v63  ;;  %v545_v6 = vpop.f32.mrf.mxu0  ;;  %1818 = vmatmul.bf16.gmra.mxu3 %v4013_v0  ;;  %v594_v10 = vpop.f32.mrf.mxu1  ;;  %v642_v15 = vadd.f32 %v641_v3, %v3913_v27  ;;  %v691_v16 = vadd.f32 %v690_v5, %v3915_v29 }
 0x10f   : > { %v546_v9 = vadd.f32 %v545_v6, %v3907_v12  ;;  %v595_v8 = vadd.f32 %v594_v10, %v3909_v13  ;;  %1992 = vmatpush.bf16.msra.mxu3 %v3158_v56  ;;  %1894 = vmatpush.bf16.msra.mxu1 %v2902_v61 }
 0x110   : > { %v747_v34 = vmul.f32 0.2, %v642_v15  ;;  %v748_v35 = vmul.f32 0.2, %v691_v16 }
 0x111   : > { %v749_v17 = vmul.f32 0.2, %v546_v9  ;;  %v750_v19 = vmul.f32 0.2, %v595_v8 }
 0x112   : > { %v811_v62 = vmax.f32 %v642_v15, %v747_v34  ;;  %v812_v7 = vmax.f32 %v691_v16, %v748_v35  ;;  %v3309_v16 = vld [vmem:[#allocation2 + $0x4] sm:$0xf]  ;;  %v2755_v35 = vld [vmem:[#allocation2 + $0x10] sm:$0xf0] }
 0x113   : > { %v813_v21 = vmax.f32 %v546_v9, %v749_v17  ;;  %v814_v28 = vmax.f32 %v595_v8, %v750_v19 }
 0x115   : > { %v4021_v36 = vpack.c.bf16 %v813_v21, %v809_v20  ;;  %v643_v37 = vpop.f32.mrf.mxu2  ;;  %v4023_v39 = vpack.c.bf16 %v814_v28, %v810_v18  ;;  %v692_v42 = vpop.f32.mrf.mxu3  ;;  %v3011_v28 = vld [vmem:[#allocation2 + $0x210] sm:$0xf0] }
 0x116   : > { %v644_v41 = vadd.f32 %v643_v37, %v3913_v27  ;;  %v548_v43 = vpop.f32.mrf.mxu0  ;;  %v693_v47 = vadd.f32 %v692_v42, %v3915_v29  ;;  %v597_v48 = vpop.f32.mrf.mxu1  ;;  %v3014_v34 = vor.u32 %v3373_v23, %v3011_v28  ;;  %v3405_v37 = vld [vmem:[#allocation2 + $0x304] sm:$0xf]  ;;  %v2758_v42 = vor.u32 %v3309_v16, %v2755_v35 }
 0x117   : > { %1676 = vmatmul.bf16.gmra.mxu0 %v4021_v36  ;;  %1725 = vmatmul.bf16.gmra.mxu1 %v4023_v39  ;;  %v549_v5 = vadd.f32 %v548_v43, %v3907_v12  ;;  %v598_v6 = vadd.f32 %v597_v48, %v3909_v13  ;;  %v3139_v43 = vld [vmem:[#allocation2 + $0x310] sm:$0xf0]  ;;  %v3341_v48 = vld [vmem:[#allocation2 + $0x104] sm:$0xf] }
 0x118   : > { %v751_v55 = vmul.f32 0.2, %v644_v41  ;;  %v752_v3 = vmul.f32 0.2, %v693_v47  ;;  %1944 = vmatpush.bf16.msra.mxu2 %v3014_v34  ;;  %1846 = vmatpush.bf16.msra.mxu0 %v2758_v42 }
 0x119   : > { %v753_v18 = vmul.f32 0.2, %v549_v5  ;;  %v754_v19 = vmul.f32 0.2, %v598_v6 }
 0x11a   : > { %v815_v4 = vmax.f32 %v644_v41, %v751_v55  ;;  %v816_v9 = vmax.f32 %v693_v47, %v752_v3  ;;  %v3142_v47 = vor.u32 %v3405_v37, %v3139_v43  ;;  %v2886_v55 = vor.u32 %v3341_v48, %v2883_v49  ;;  %v2873_v48 = vld [vmem:[#allocation2 + $0xe8] sm:$0xf] }
 0x11b   : > { %v818_v44 = vmax.f32 %v598_v6, %v754_v19  ;;  %v817_v51 = vmax.f32 %v549_v5, %v753_v18 }
 0x11c   : > { %v4031_v10 = vpack.c.bf16 %v815_v4, %v811_v62  ;;  %v4033_v8 = vpack.c.bf16 %v816_v9, %v812_v7  ;;  %1993 = vmatpush.bf16.msra.mxu3 %v3142_v47  ;;  %1895 = vmatpush.bf16.msra.mxu1 %v2886_v55  ;;  %v3404_v47 = vld [vmem:[#allocation2 + $0x2f4] sm:$0xf0] }
 0x11d   : > { %v646_v17 = vpop.f32.mrf.mxu2  ;;  %v695_v20 = vpop.f32.mrf.mxu3 }
 0x11e   : > { %1774 = vmatmul.bf16.gmra.mxu2 %v4031_v10  ;;  %v550_v15 = vpop.f32.mrf.mxu0  ;;  %1823 = vmatmul.bf16.gmra.mxu3 %v4033_v8  ;;  %v599_v22 = vpop.f32.mrf.mxu1  ;;  %v647_v45 = vadd.f32 %v646_v17, %v3913_v27  ;;  %v696_v53 = vadd.f32 %v695_v20, %v3915_v29 }
 0x11f   : > { %v551_v21 = vadd.f32 %v550_v15, %v3907_v12  ;;  %v600_v33 = vadd.f32 %v599_v22, %v3909_v13 }
 0x120   : > { %v755_v3 = vmul.f32 0.2, %v647_v45  ;;  %v756_v17 = vmul.f32 0.2, %v696_v53 }
 0x121   : > { %v757_v41 = vmul.f32 0.2, %v551_v21  ;;  %v758_v46 = vmul.f32 0.2, %v600_v33 }
 0x122   : > { %v819_v15 = vmax.f32 %v647_v45, %v755_v3  ;;  %v820_v28 = vmax.f32 %v696_v53, %v756_v17  ;;  %v3340_v53 = vld [vmem:[#allocation2 + $0xf4] sm:$0xf0] }
 0x123   : > { %v821_v54 = vmax.f32 %v551_v21, %v757_v41  ;;  %v822_v56 = vmax.f32 %v600_v33, %v758_v46  ;;  %v3129_v46 = vld [vmem:[#allocation2 + $0x2e8] sm:$0xf] }
 0x125   : > { %v4041_v61 = vpack.c.bf16 %v821_v54, %v817_v51  ;;  %v648_v62 = vpop.f32.mrf.mxu2  ;;  %v4043_v4 = vpack.c.bf16 %v822_v56, %v818_v44  ;;  %v697_v7 = vpop.f32.mrf.mxu3  ;;  %v3130_v51 = vor.u32 %v3404_v47, %v3129_v46  ;;  %v3257_v54 = vld [vmem:[#allocation2 + $0x3e8] sm:$0xf]  ;;  %v2874_v56 = vor.u32 %v3340_v53, %v2873_v48 }
 0x126   : > { %v649_v6 = vadd.f32 %v648_v62, %v3913_v27  ;;  %v553_v9 = vpop.f32.mrf.mxu0  ;;  %v698_v5 = vadd.f32 %v697_v7, %v3915_v29  ;;  %v602_v18 = vpop.f32.mrf.mxu1  ;;  %v3436_v62 = vld [vmem:[#allocation2 + $0x3f4] sm:$0xf0] }
 0x127   : > { %1681 = vmatmul.bf16.gmra.mxu0 %v4041_v61  ;;  %1730 = vmatmul.bf16.gmra.mxu1 %v4043_v4  ;;  %v554_v22 = vadd.f32 %v553_v9, %v3907_v12  ;;  %v603_v23 = vadd.f32 %v602_v18, %v3909_v13  ;;  %v3258_v9 = vor.u32 %v3436_v62, %v3257_v54  ;;  %v3336_v54 = vld [vmem:[#allocation2 + $0xd4] sm:$0xf0] }
 0x128   : > { %v759_v19 = vmul.f32 0.2, %v649_v6  ;;  %v760_v20 = vmul.f32 0.2, %v698_v5  ;;  %2133 = vmatpush.bf16.msrb.mxu2 %v3130_v51  ;;  %2035 = vmatpush.bf16.msrb.mxu0 %v2874_v56  ;;  %v2857_v51 = vld [vmem:[#allocation2 + $0xc8] sm:$0xf] }
 0x129   : > { %v761_v37 = vmul.f32 0.2, %v554_v22  ;;  %v762_v41 = vmul.f32 0.2, %v603_v23  ;;  %2182 = vmatpush.bf16.msrb.mxu3 %v3258_v9  ;;  %v3432_v56 = vld [vmem:[#allocation2 + $0x3d4] sm:$0xf0] }
 0x12a   : > { %v823_v21 = vmax.f32 %v649_v6, %v759_v19  ;;  %v824_v16 = vmax.f32 %v698_v5, %v760_v20  ;;  %v3372_v19 = vld [vmem:[#allocation2 + $0x1f4] sm:$0xf0]  ;;  %v2985_v9 = vld [vmem:[#allocation2 + $0x1c8] sm:$0xf] }
 0x12b   : > { %v826_v3 = vmax.f32 %v603_v23, %v762_v41  ;;  %v825_v17 = vmax.f32 %v554_v22, %v761_v37 }
 0x12c   : > { %v4051_v33 = vpack.c.bf16 %v823_v21, %v819_v15  ;;  %v4053_v34 = vpack.c.bf16 %v824_v16, %v820_v28 }
 0x12d   : > { %v651_v35 = vpop.f32.mrf.mxu2  ;;  %v700_v42 = vpop.f32.mrf.mxu3 }
 0x12e   : > { %4441 = vst [vmem:[#allocation11_spill] sm:$0xff] %v4053_v34  ;;  %1779 = vmatmul.bf16.gmra.mxu2 %v4051_v33  ;;  %v555_v43 = vpop.f32.mrf.mxu0  ;;  %1828 = vmatmul.bf16.gmra.mxu3 %v4053_v34  ;;  %v604_v45 = vpop.f32.mrf.mxu1  ;;  %v652_v6 = vadd.f32 %v651_v35, %v3913_v27 }
 0x12f   : > { %v556_v44 = vadd.f32 %v555_v43, %v3907_v12  ;;  %v605_v49 = vadd.f32 %v604_v45, %v3909_v13  ;;  %v701_v12 = vadd.f32 %v700_v42, %v3915_v29  ;;  %v3001_v13 = vld [vmem:[#allocation2 + $0x1e8] sm:$0xf] }
 0x130   : > { %v3002_v21 = vor.u32 %v3372_v19, %v3001_v13  ;;  %v763_v28 = vmul.f32 0.2, %v652_v6 }
 0x131   : > { %v765_v55 = vmul.f32 0.2, %v556_v44  ;;  %v766_v7 = vmul.f32 0.2, %v605_v49  ;;  %v764_v41 = vmul.f32 0.2, %v701_v12 }
 0x132   : > { %2084 = vmatpush.bf16.msrb.mxu1 %v3002_v21  ;;  %v827_v43 = vmax.f32 %v652_v6, %v763_v28 }
 0x133   : > { %v829_v5 = vmax.f32 %v556_v44, %v765_v55  ;;  %v830_v18 = vmax.f32 %v605_v49, %v766_v7  ;;  %v828_v45 = vmax.f32 %v701_v12, %v764_v41  ;;  %v3400_v49 = vld [vmem:[#allocation2 + $0x2d4] sm:$0xf0]  ;;  %v3241_v55 = vld [vmem:[#allocation2 + $0x3c8] sm:$0xf] }
 0x134   : > { %v3242_v6 = vor.u32 %v3432_v56, %v3241_v55  ;;  %v2841_v41 = vld [vmem:[#allocation2 + $0xa8] sm:$0xf]  ;;  %v3364_v55 = vld [vmem:[#allocation2 + $0x1b4] sm:$0xf0] }
 0x135   : > { %v4061_v20 = vpack.c.bf16 %v829_v5, %v825_v17  ;;  %v653_v15 = vpop.f32.mrf.mxu2  ;;  %v4063_v23 = vpack.c.bf16 %v830_v18, %v826_v3  ;;  %v702_v35 = vpop.f32.mrf.mxu3  ;;  %v2858_v3 = vor.u32 %v3336_v54, %v2857_v51  ;;  %v3368_v17 = vld [vmem:[#allocation2 + $0x1d4] sm:$0xf0]  ;;  %v2969_v54 = vld [vmem:[#allocation2 + $0x1a8] sm:$0xf] }
 0x136   : > { %v654_v16 = vadd.f32 %v653_v15, %v3913_v27  ;;  %v703_v22 = vadd.f32 %v702_v35, %v3915_v29  ;;  %v4077_v27 = vld [vmem:[%s4428_s4] sm:$0xf]  ;;  %v3113_v29 = vld [vmem:[#allocation2 + $0x2c8] sm:$0xf]  ;;  %2183 = vmatpush.bf16.msrb.mxu3 %v3242_v6  ;;  %v2986_v18 = vor.u32 %v3368_v17, %v2985_v9  ;;  %v3396_v35 = vld [vmem:[#allocation2 + $0x2b4] sm:$0xf0]  ;;  %v2970_v6 = vor.u32 %v3364_v55, %v2969_v54 }
 0x137   : > { %1686 = vmatmul.bf16.gmra.mxu0 %v4061_v20  ;;  %1735 = vmatmul.bf16.gmra.mxu1 %v4063_v23  ;;  %v3114_v53 = vor.u32 %v3400_v49, %v3113_v29  ;;  %v4081_v62 = vperm.slane %v4077_v27, 0  ;;  %v3360_v54 = vld [vmem:[#allocation2 + $0x194] sm:$0xf0] }
 0x138   : > { %v767_v37 = vmul.f32 0.2, %v654_v16  ;;  %v768_v42 = vmul.f32 0.2, %v703_v22  ;;  %2036 = vmatpush.bf16.msrb.mxu0 %v2858_v3  ;;  %2085 = vmatpush.bf16.msrb.mxu1 %v2986_v18 }
 0x139   : > { %2134 = vmatpush.bf16.msrb.mxu2 %v3114_v53 }
 0x13a   : > { %v831_v44 = vmax.f32 %v654_v16, %v767_v37  ;;  %v832_v46 = vmax.f32 %v703_v22, %v768_v42  ;;  %v3097_v16 = vld [vmem:[#allocation2 + $0x2a8] sm:$0xf]  ;;  %v3332_v37 = vld [vmem:[#allocation2 + $0xb4] sm:$0xf0] }
 0x13b   : > { %v3098_v22 = vor.u32 %v3396_v35, %v3097_v16  ;;  %v3225_v42 = vld [vmem:[#allocation2 + $0x3a8] sm:$0xf]  ;;  %v3392_v16 = vld [vmem:[#allocation2 + $0x294] sm:$0xf0] }
 0x13c   : > { %v4069_v47 = vpack.c.bf16 %v831_v44, %v827_v43  ;;  %v4071_v48 = vpack.c.bf16 %v832_v46, %v828_v45  ;;  %v3428_v43 = vld [vmem:[#allocation2 + $0x3b4] sm:$0xf0]  ;;  %v2842_v45 = vor.u32 %v3332_v37, %v2841_v41  ;;  %2086 = vmatpush.bf16.msrb.mxu1 %v2970_v6  ;;  %v2825_v35 = vld [vmem:[#allocation2 + $0x88] sm:$0xf] }
 0x13d   : > { %v3226_v46 = vor.u32 %v3428_v43, %v3225_v42  ;;  %2135 = vmatpush.bf16.msrb.mxu2 %v3098_v22  ;;  %v3328_v22 = vld [vmem:[#allocation2 + $0x94] sm:$0xf0]  ;;  %v3209_v37 = vld [vmem:[#allocation2 + $0x388] sm:$0xf] }
 0x13e   : > { %1784 = vmatmul.bf16.gmra.mxu2 %v4069_v47  ;;  %1833 = vmatmul.bf16.gmra.mxu3 %v4071_v48  ;;  %v3424_v42 = vld [vmem:[#allocation2 + $0x394] sm:$0xf0]  ;;  %v2826_v43 = vor.u32 %v3328_v22, %v2825_v35 }
 0x13f   : > { %2037 = vmatpush.bf16.msrb.mxu0 %v2842_v45  ;;  %2184 = vmatpush.bf16.msrb.mxu3 %v3226_v46  ;;  %v3388_v35 = vld [vmem:[#allocation2 + $0x274] sm:$0xf0] }
 0x143   : > { %2038 = vmatpush.bf16.msrb.mxu0 %v2826_v43 }
 0x144   : > { %v1652_v7 = vpop.f32.mrf.mxu0  ;;  %v1701_v5 = vpop.f32.mrf.mxu1 }
 0x145   : > { %v1653_v12 = vadd.f32 %v1652_v7, %v4081_v62 }
 0x147   : > { %v1702_v13 = vadd.f32 %v1701_v5, %v1653_v12  ;;  %1847 = vmatmul.bf16.vlgmr.msra.gmra.mxu0 %v3921_v50  ;;  %1896 = vmatmul.bf16.vlgmr.msra.gmra.mxu1 %v3923_v52 }
 0x14c   : > { %v1654_v19 = vpop.f32.mrf.mxu0  ;;  %v1703_v21 = vpop.f32.mrf.mxu1 }
 0x14d   : > { %v1655_v15 = vadd.f32 %v1654_v19, %v4081_v62 }
 0x14e   : > { %1945 = vmatmul.bf16.vlgmr.msra.gmra.mxu2 %v3931_v11  ;;  %1994 = vmatmul.bf16.vlgmr.msra.gmra.mxu3 %v3933_v14 }
 0x14f   : > { %v1704_v28 = vadd.f32 %v1703_v21, %v1655_v15  ;;  %v3081_v21 = vld [vmem:[#allocation2 + $0x288] sm:$0xf] }
 0x150   : > { %v3082_v41 = vor.u32 %v3392_v16, %v3081_v21  ;;  %v3065_v16 = vld [vmem:[#allocation2 + $0x268] sm:$0xf] }
 0x151   : > { %v1750_v44 = vpop.f32.mrf.mxu2  ;;  %v1799_v49 = vpop.f32.mrf.mxu3  ;;  %v3066_v22 = vor.u32 %v3388_v35, %v3065_v16 }
 0x152   : > { %v1751_v29 = vadd.f32 %v1750_v44, %v1702_v13  ;;  %v3210_v44 = vor.u32 %v3424_v42, %v3209_v37  ;;  %2136 = vmatpush.bf16.msrb.mxu2 %v3082_v41  ;;  %v2809_v41 = vld [vmem:[#allocation2 + $0x68] sm:$0xf]  ;;  %v3324_v37 = vld [vmem:[#allocation2 + $0x74] sm:$0xf0] }
 0x153   : > { %v3193_v42 = vld [vmem:[#allocation2 + $0x368] sm:$0xf]  ;;  %v2810_v43 = vor.u32 %v3324_v37, %v2809_v41  ;;  %v3384_v37 = vld [vmem:[#allocation2 + $0x254] sm:$0xf0] }
 0x154   : > { %v4089_v51 = vadd.f32 %v1799_v49, %v1751_v29  ;;  %v1657_v53 = vpop.f32.mrf.mxu0  ;;  %v1706_v3 = vpop.f32.mrf.mxu1  ;;  %2185 = vmatpush.bf16.msrb.mxu3 %v3210_v44 }
 0x155   : > { %v1658_v56 = vadd.f32 %v1657_v53, %v4081_v62  ;;  %v2953_v53 = vld [vmem:[#allocation2 + $0x188] sm:$0xf]  ;;  %2039 = vmatpush.bf16.msrb.mxu0 %v2810_v43 }
 0x156   : > { %2137 = vmatpush.bf16.msrb.mxu2 %v3066_v22  ;;  %v3049_v22 = vld [vmem:[#allocation2 + $0x248] sm:$0xf] }
 0x157   : > { %v1707_v7 = vadd.f32 %v1706_v3, %v1658_v56  ;;  %1852 = vmatmul.bf16.gmra.mxu0 %v3941_v38  ;;  %1901 = vmatmul.bf16.gmra.mxu1 %v3943_v40  ;;  %v2954_v3 = vor.u32 %v3360_v54, %v2953_v53  ;;  %v2937_v54 = vld [vmem:[#allocation2 + $0x168] sm:$0xf] }
 0x158   : > { %v3177_v43 = vld [vmem:[#allocation2 + $0x348] sm:$0xf] }
 0x159   : > { %v1752_v9 = vpop.f32.mrf.mxu2  ;;  %v1801_v12 = vpop.f32.mrf.mxu3  ;;  %2087 = vmatpush.bf16.msrb.mxu1 %v2954_v3 }
 0x15a   : > { %v1753_v17 = vadd.f32 %v1752_v9, %v1704_v28 }
 0x15c   : > { %v4094_v5 = vadd.f32 %v1801_v12, %v1753_v17  ;;  %v1659_v18 = vpop.f32.mrf.mxu0  ;;  %v1708_v19 = vpop.f32.mrf.mxu1 }
 0x15d   : > { %v1660_v13 = vadd.f32 %v1659_v18, %v4081_v62 }
 0x15e   : > { %1950 = vmatmul.bf16.gmra.mxu2 %v3951_v1  ;;  %1999 = vmatmul.bf16.gmra.mxu3 %v3953_v2 }
 0x15f   : > { %v1709_v15 = vadd.f32 %v1708_v19, %v1660_v13 }
 0x161   : > { %v1755_v28 = vpop.f32.mrf.mxu2  ;;  %v1804_v46 = vpop.f32.mrf.mxu3 }
 0x162   : > { %v1756_v45 = vadd.f32 %v1755_v28, %v1707_v7  ;;  %v3420_v28 = vld [vmem:[#allocation2 + $0x374] sm:$0xf0] }
 0x163   : > { %v3194_v44 = vor.u32 %v3420_v28, %v3193_v42  ;;  %v2793_v42 = vld [vmem:[#allocation2 + $0x48] sm:$0xf]  ;;  %v3050_v28 = vor.u32 %v3384_v37, %v3049_v22 }
 0x164   : > { %v4099_v29 = vadd.f32 %v1804_v46, %v1756_v45  ;;  %v1662_v49 = vpop.f32.mrf.mxu0  ;;  %v1711_v56 = vpop.f32.mrf.mxu1 }
 0x165   : > { %v1663_v55 = vadd.f32 %v1662_v49, %v4081_v62  ;;  %2186 = vmatpush.bf16.msrb.mxu3 %v3194_v44  ;;  %v3416_v44 = vld [vmem:[#allocation2 + $0x354] sm:$0xf0]  ;;  %2138 = vmatpush.bf16.msrb.mxu2 %v3050_v28 }
 0x167   : > { %v1712_v6 = vadd.f32 %v1711_v56, %v1663_v55  ;;  %1857 = vmatmul.bf16.gmra.mxu0 %v3961_v30  ;;  %1906 = vmatmul.bf16.gmra.mxu1 %v3963_v32  ;;  %v3356_v55 = vld [vmem:[#allocation2 + $0x174] sm:$0xf0] }
 0x169   : > { %v1757_v7 = vpop.f32.mrf.mxu2  ;;  %v1806_v17 = vpop.f32.mrf.mxu3 }
 0x16a   : > { %v1758_v9 = vadd.f32 %v1757_v7, %v1709_v15  ;;  %v2938_v7 = vor.u32 %v3356_v55, %v2937_v54 }
 0x16c   : > { %v4104_v12 = vadd.f32 %v1806_v17, %v1758_v9  ;;  %v1664_v18 = vpop.f32.mrf.mxu0  ;;  %v1713_v19 = vpop.f32.mrf.mxu1  ;;  %2088 = vmatpush.bf16.msrb.mxu1 %v2938_v7  ;;  %v3352_v7 = vld [vmem:[#allocation2 + $0x154] sm:$0xf0] }
 0x16d   : > { %v1665_v13 = vadd.f32 %v1664_v18, %v4081_v62 }
 0x16e   : > { %1955 = vmatmul.bf16.gmra.mxu2 %v3971_v59  ;;  %2004 = vmatmul.bf16.gmra.mxu3 %v3973_v60 }
 0x16f   : > { %v1714_v21 = vadd.f32 %v1713_v19, %v1665_v13 }
 0x171   : > { %v1760_v15 = vpop.f32.mrf.mxu2  ;;  %v1809_v46 = vpop.f32.mrf.mxu3 }
 0x172   : > { %v1761_v45 = vadd.f32 %v1760_v15, %v1712_v6  ;;  %v3320_v15 = vld [vmem:[#allocation2 + $0x54] sm:$0xf0] }
 0x174   : > { %v4109_v49 = vadd.f32 %v1809_v46, %v1761_v45  ;;  %v1667_v53 = vpop.f32.mrf.mxu0  ;;  %v1716_v3 = vpop.f32.mrf.mxu1  ;;  %v2794_v45 = vor.u32 %v3320_v15, %v2793_v42  ;;  %v3178_v46 = vor.u32 %v3416_v44, %v3177_v43  ;;  %v3033_v43 = vld [vmem:[#allocation2 + $0x228] sm:$0xf]  ;;  %v3380_v44 = vld [vmem:[#allocation2 + $0x234] sm:$0xf0] }
 0x175   : > { %v1668_v56 = vadd.f32 %v1667_v53, %v4081_v62 }
 0x176   : > { %2040 = vmatpush.bf16.msrb.mxu0 %v2794_v45  ;;  %2187 = vmatpush.bf16.msrb.mxu3 %v3178_v46  ;;  %v3034_v45 = vor.u32 %v3380_v44, %v3033_v43  ;;  %v3316_v46 = vld [vmem:[#allocation2 + $0x34] sm:$0xf0] }
 0x177   : > { %v1717_v9 = vadd.f32 %v1716_v3, %v1668_v56  ;;  %1862 = vmatmul.bf16.gmra.mxu0 %v3981_v24  ;;  %1911 = vmatmul.bf16.gmra.mxu1 %v3983_v26  ;;  %v2921_v3 = vld [vmem:[#allocation2 + $0x148] sm:$0xf] }
 0x178   : > { %2139 = vmatpush.bf16.msrb.mxu2 %v3034_v45 }
 0x179   : > { %v1762_v6 = vpop.f32.mrf.mxu2  ;;  %v1811_v18 = vpop.f32.mrf.mxu3 }
 0x17a   : > { %v1763_v17 = vadd.f32 %v1762_v6, %v1714_v21 }
 0x17c   : > { %v4114_v13 = vadd.f32 %v1811_v18, %v1763_v17  ;;  %v1669_v19 = vpop.f32.mrf.mxu0  ;;  %v1718_v35 = vpop.f32.mrf.mxu1  ;;  %v2922_v18 = vor.u32 %v3352_v7, %v2921_v3 }
 0x17d   : > { %v1670_v16 = vadd.f32 %v1669_v19, %v4081_v62 }
 0x17e   : > { %1960 = vmatmul.bf16.gmra.mxu2 %v3991_v57  ;;  %2009 = vmatmul.bf16.gmra.mxu3 %v3993_v58 }
 0x17f   : > { %v1719_v41 = vadd.f32 %v1718_v35, %v1670_v16  ;;  %2089 = vmatpush.bf16.msrb.mxu1 %v2922_v18 }
 0x181   : > { %v1765_v21 = vpop.f32.mrf.mxu2  ;;  %v1814_v54 = vpop.f32.mrf.mxu3 }
 0x182   : > { %v1766_v53 = vadd.f32 %v1765_v21, %v1717_v9  ;;  %v2777_v21 = vld [vmem:[#allocation2 + $0x28] sm:$0xf] }
 0x184   : > { %v4119_v55 = vadd.f32 %v1814_v54, %v1766_v53  ;;  %v1672_v56 = vpop.f32.mrf.mxu0  ;;  %v1721_v17 = vpop.f32.mrf.mxu1  ;;  %v3161_v53 = vld [vmem:[#allocation2 + $0x328] sm:$0xf]  ;;  %v3412_v54 = vld [vmem:[#allocation2 + $0x334] sm:$0xf0] }
 0x185   : > { %v1673_v6 = vadd.f32 %v1672_v56, %v4081_v62  ;;  %v2778_v56 = vor.u32 %v3316_v46, %v2777_v21  ;;  %v3162_v3 = vor.u32 %v3412_v54, %v3161_v53 }
 0x187   : > { %v1722_v19 = vadd.f32 %v1721_v17, %v1673_v6  ;;  %1867 = vmatmul.bf16.gmra.mxu0 %v4001_v25  ;;  %1916 = vmatmul.bf16.gmra.mxu1 %v4003_v31 }
 0x188   : > { %2041 = vmatpush.bf16.msrb.mxu0 %v2778_v56  ;;  %2188 = vmatpush.bf16.msrb.mxu3 %v3162_v3  ;;  %v3376_v56 = vld [vmem:[#allocation2 + $0x214] sm:$0xf0]  ;;  %v2761_v3 = vld [vmem:[#allocation2 + $0x8] sm:$0xf] }
 0x189   : > { %v1767_v9 = vpop.f32.mrf.mxu2  ;;  %v1816_v35 = vpop.f32.mrf.mxu3 }
 0x18a   : > { %v1768_v16 = vadd.f32 %v1767_v9, %v1719_v41  ;;  %v2905_v9 = vld [vmem:[#allocation2 + $0x128] sm:$0xf] }
 0x18c   : > { %v4124_v22 = vadd.f32 %v1816_v35, %v1768_v16  ;;  %v1674_v37 = vpop.f32.mrf.mxu0  ;;  %v1723_v28 = vpop.f32.mrf.mxu1  ;;  %v3348_v16 = vld [vmem:[#allocation2 + $0x134] sm:$0xf0] }
 0x18d   : > { %v1675_v42 = vadd.f32 %v1674_v37, %v4081_v62 }
 0x18e   : > { %1965 = vmatmul.bf16.gmra.mxu2 %v4011_v63  ;;  %2014 = vmatmul.bf16.gmra.mxu3 %v4013_v0 }
 0x18f   : > { %v1724_v15 = vadd.f32 %v1723_v28, %v1675_v42  ;;  %v2906_v42 = vor.u32 %v3348_v16, %v2905_v9  ;;  %v3408_v9 = vld [vmem:[#allocation2 + $0x314] sm:$0xf0] }
 0x191   : > { %v1770_v41 = vpop.f32.mrf.mxu2  ;;  %v1819_v6 = vpop.f32.mrf.mxu3  ;;  %2090 = vmatpush.bf16.msrb.mxu1 %v2906_v42 }
 0x192   : > { %v1771_v7 = vadd.f32 %v1770_v41, %v1722_v19  ;;  %v3017_v41 = vld [vmem:[#allocation2 + $0x208] sm:$0xf] }
 0x194   : > { %v4129_v17 = vadd.f32 %v1819_v6, %v1771_v7  ;;  %v1677_v18 = vpop.f32.mrf.mxu0  ;;  %v1726_v37 = vpop.f32.mrf.mxu1  ;;  %v3018_v7 = vor.u32 %v3376_v56, %v3017_v41  ;;  %v3312_v6 = vld [vmem:[#allocation2 + $0x14] sm:$0xf0] }
 0x195   : > { %v1678_v35 = vadd.f32 %v1677_v18, %v4081_v62  ;;  %v3145_v18 = vld [vmem:[#allocation2 + $0x308] sm:$0xf]  ;;  %v2762_v16 = vor.u32 %v3312_v6, %v2761_v3 }
 0x196   : > { %2140 = vmatpush.bf16.msrb.mxu2 %v3018_v7 }
 0x197   : > { %v1727_v28 = vadd.f32 %v1726_v37, %v1678_v35  ;;  %1872 = vmatmul.bf16.gmra.mxu0 %v4021_v36  ;;  %1921 = vmatmul.bf16.gmra.mxu1 %v4023_v39  ;;  %v3146_v35 = vor.u32 %v3408_v9, %v3145_v18 }
 0x198   : > { %2042 = vmatpush.bf16.msrb.mxu0 %v2762_v16 }
 0x199   : > { %v1772_v19 = vpop.f32.mrf.mxu2  ;;  %v1821_v44 = vpop.f32.mrf.mxu3  ;;  %2189 = vmatpush.bf16.msrb.mxu3 %v3146_v35  ;;  %v3402_v35 = vld [vmem:[#allocation2 + $0x2ec] sm:$0xf] }
 0x19a   : > { %v1773_v43 = vadd.f32 %v1772_v19, %v1724_v15  ;;  %v2889_v19 = vld [vmem:[#allocation2 + $0x108] sm:$0xf] }
 0x19c   : > { %v4134_v21 = vadd.f32 %v1821_v44, %v1773_v43  ;;  %v1679_v45 = vpop.f32.mrf.mxu0  ;;  %v1728_v53 = vpop.f32.mrf.mxu1  ;;  %v3344_v43 = vld [vmem:[#allocation2 + $0x114] sm:$0xf0] }
 0x19d   : > { %v1680_v46 = vadd.f32 %v1679_v45, %v4081_v62 }
 0x19e   : > { %1970 = vmatmul.bf16.gmra.mxu2 %v4031_v10  ;;  %2019 = vmatmul.bf16.gmra.mxu3 %v4033_v8 }
 0x19f   : > { %v1729_v54 = vadd.f32 %v1728_v53, %v1680_v46  ;;  %v2890_v46 = vor.u32 %v3344_v43, %v2889_v19  ;;  %v2875_v43 = vld [vmem:[#allocation2 + $0xf8] sm:$0xf0] }
 0x1a1   : > { %v1775_v15 = vpop.f32.mrf.mxu2  ;;  %v1824_v42 = vpop.f32.mrf.mxu3  ;;  %2091 = vmatpush.bf16.msrb.mxu1 %v2890_v46  ;;  %v3259_v46 = vld [vmem:[#allocation2 + $0x3f8] sm:$0xf0] }
 0x1a2   : > { %v1776_v37 = vadd.f32 %v1775_v15, %v1727_v28 }
 0x1a4   : > { %v4139_v44 = vadd.f32 %v1824_v42, %v1776_v37  ;;  %v1682_v45 = vpop.f32.mrf.mxu0  ;;  %v1731_v41 = vpop.f32.mrf.mxu1  ;;  %v3131_v37 = vld [vmem:[#allocation2 + $0x2f8] sm:$0xf0]  ;;  %v3338_v42 = vld [vmem:[#allocation2 + $0xec] sm:$0xf] }
 0x1a5   : > { %v1683_v53 = vadd.f32 %v1682_v45, %v4081_v62  ;;  %v3134_v19 = vor.u32 %v3402_v35, %v3131_v37  ;;  %v3434_v45 = vld [vmem:[#allocation2 + $0x3ec] sm:$0xf]  ;;  %v3003_v37 = vld [vmem:[#allocation2 + $0x1f8] sm:$0xf0] }
 0x1a6   : > { %v3370_v35 = vld [vmem:[#allocation2 + $0x1ec] sm:$0xf] }
 0x1a7   : > { %v1732_v56 = vadd.f32 %v1731_v41, %v1683_v53  ;;  %1877 = vmatmul.bf16.gmra.mxu0 %v4041_v61  ;;  %1926 = vmatmul.bf16.gmra.mxu1 %v4043_v4  ;;  %v2878_v53 = vor.u32 %v3338_v42, %v2875_v43  ;;  %v3262_v41 = vor.u32 %v3434_v45, %v3259_v46 }
 0x1a8   : > { %2329 = vmatpush.bf16.msra.mxu2 %v3134_v19  ;;  %v3006_v43 = vor.u32 %v3370_v35, %v3003_v37  ;;  %v2859_v35 = vld [vmem:[#allocation2 + $0xd8] sm:$0xf0] }
 0x1a9   : > { %v1777_v28 = vpop.f32.mrf.mxu2  ;;  %v1826_v7 = vpop.f32.mrf.mxu3  ;;  %2231 = vmatpush.bf16.msra.mxu0 %v2878_v53  ;;  %2378 = vmatpush.bf16.msra.mxu3 %v3262_v41  ;;  %v3243_v37 = vld [vmem:[#allocation2 + $0x3d8] sm:$0xf0] }
 0x1aa   : > { %v1778_v3 = vadd.f32 %v1777_v28, %v1729_v54  ;;  %2280 = vmatpush.bf16.msra.mxu1 %v3006_v43 }
 0x1ac   : > { %v4144_v6 = vadd.f32 %v1826_v7, %v1778_v3  ;;  %v1684_v18 = vpop.f32.mrf.mxu0  ;;  %v1733_v15 = vpop.f32.mrf.mxu1 }
 0x1ad   : > { %v1685_v9 = vadd.f32 %v1684_v18, %v4081_v62 }
 0x1ae   : > { %1975 = vmatmul.bf16.gmra.mxu2 %v4051_v33  ;;  %2024 = vmatmul.bf16.gmra.mxu3 %v4053_v34 }
 0x1af   : > { %v1734_v16 = vadd.f32 %v1733_v15, %v1685_v9 }
 0x1b1   : > { %v1780_v54 = vpop.f32.mrf.mxu2  ;;  %v1829_v3 = vpop.f32.mrf.mxu3 }
 0x1b2   : > { %v1781_v28 = vadd.f32 %v1780_v54, %v1732_v56 }
 0x1b4   : > { %v4149_v7 = vadd.f32 %v1829_v3, %v1781_v28  ;;  %v1687_v18 = vpop.f32.mrf.mxu0  ;;  %v1736_v15 = vpop.f32.mrf.mxu1  ;;  %v3398_v28 = vld [vmem:[#allocation2 + $0x2cc] sm:$0xf]  ;;  %v3115_v3 = vld [vmem:[#allocation2 + $0x2d8] sm:$0xf0] }
 0x1b5   : > { %v1688_v9 = vadd.f32 %v1687_v18, %v4081_v62  ;;  %v3334_v18 = vld [vmem:[#allocation2 + $0xcc] sm:$0xf] }
 0x1b7   : > { %v1737_v34 = vadd.f32 %v1736_v15, %v1688_v9  ;;  %1882 = vmatmul.bf16.gmra.mxu0 %v4061_v20  ;;  %1931 = vmatmul.bf16.gmra.mxu1 %v4063_v23  ;;  %v3118_v15 = vor.u32 %v3398_v28, %v3115_v3  ;;  %v3366_v28 = vld [vmem:[#allocation2 + $0x1cc] sm:$0xf] }
 0x1b9   : > { %v1782_v42 = vpop.f32.mrf.mxu2  ;;  %v1831_v45 = vpop.f32.mrf.mxu3  ;;  %2330 = vmatpush.bf16.msra.mxu2 %v3118_v15 }
 0x1ba   : > { %v1783_v56 = vadd.f32 %v1782_v42, %v1734_v16  ;;  %v3430_v16 = vld [vmem:[#allocation2 + $0x3cc] sm:$0xf] }
 0x1bc   : > { %v4154_v19 = vadd.f32 %v1831_v45, %v1783_v56  ;;  %v1689_v46 = vpop.f32.mrf.mxu0  ;;  %v1738_v53 = vpop.f32.mrf.mxu1  ;;  %v2862_v56 = vor.u32 %v3334_v18, %v2859_v35  ;;  %v3246_v45 = vor.u32 %v3430_v16, %v3243_v37 }
 0x1bd   : > { %v1690_v54 = vadd.f32 %v1689_v46, %v4081_v62 }
 0x1be   : > { %1980 = vmatmul.bf16.gmra.mxu2 %v4069_v47  ;;  %2029 = vmatmul.bf16.gmra.mxu3 %v4071_v48 }
 0x1bf   : > { %v1739_v41 = vadd.f32 %v1738_v53, %v1690_v54  ;;  %2232 = vmatpush.bf16.msra.mxu0 %v2862_v56  ;;  %2379 = vmatpush.bf16.msra.mxu3 %v3246_v45  ;;  %v4163_v53 = vperm.slane %v4077_v27, 1  ;;  %v3099_v56 = vld [vmem:[#allocation2 + $0x2b8] sm:$0xf0]  ;;  %v3330_v45 = vld [vmem:[#allocation2 + $0xac] sm:$0xf] }
 0x1c1   : > { %v1785_v9 = vpop.f32.mrf.mxu2  ;;  %v1834_v43 = vpop.f32.mrf.mxu3 }
 0x1c2   : > { %v1786_v42 = vadd.f32 %v1785_v9, %v1737_v34  ;;  %v2987_v34 = vld [vmem:[#allocation2 + $0x1d8] sm:$0xf0] }
 0x1c3   : > { %v2990_v18 = vor.u32 %v3366_v28, %v2987_v34  ;;  %v2843_v34 = vld [vmem:[#allocation2 + $0xb8] sm:$0xf0] }
 0x1c4   : > { %v4159_v62 = vadd.f32 %v1834_v43, %v1786_v42  ;;  %v1848_v46 = vpop.f32.mrf.mxu0  ;;  %v1897_v54 = vpop.f32.mrf.mxu1  ;;  %v3394_v43 = vld [vmem:[#allocation2 + $0x2ac] sm:$0xf] }
 0x1c5   : > { %2281 = vmatpush.bf16.msra.mxu1 %v2990_v18  ;;  %v1849_v35 = vadd.f32 %v1848_v46, %v4163_v53  ;;  %v3227_v18 = vld [vmem:[#allocation2 + $0x3b8] sm:$0xf0] }
 0x1c7   : > { %2043 = vmatmul.bf16.vlgmr.msrb.gmra.mxu0 %v3921_v50  ;;  %2092 = vmatmul.bf16.vlgmr.msrb.gmra.mxu1 %v3923_v52  ;;  %v1898_v27 = vadd.f32 %v1897_v54, %v1849_v35 }
 0x1c9   : > { %v1787_v3 = vpop.f32.mrf.mxu2  ;;  %v1836_v15 = vpop.f32.mrf.mxu3 }
 0x1ca   : > { %v1788_v9 = vadd.f32 %v1787_v3, %v1739_v41  ;;  %v3102_v41 = vor.u32 %v3394_v43, %v3099_v56  ;;  %v3426_v3 = vld [vmem:[#allocation2 + $0x3ac] sm:$0xf]  ;;  %v2971_v56 = vld [vmem:[#allocation2 + $0x1b8] sm:$0xf0] }
 0x1cc   : > { %v4167_v16 = vadd.f32 %v1836_v15, %v1788_v9  ;;  %v1850_v37 = vpop.f32.mrf.mxu0  ;;  %v1899_v42 = vpop.f32.mrf.mxu1  ;;  %v2846_v15 = vor.u32 %v3330_v45, %v2843_v34  ;;  %2331 = vmatpush.bf16.msra.mxu2 %v3102_v41 }
 0x1ce   : > { %4442 = vst [vmem:[#allocation12_spill] sm:$0xff] %v4167_v16  ;;  %2141 = vmatmul.bf16.vlgmr.msrb.gmra.mxu2 %v3931_v11  ;;  %2190 = vmatmul.bf16.vlgmr.msrb.gmra.mxu3 %v3933_v14  ;;  %v3230_v16 = vor.u32 %v3426_v3, %v3227_v18  ;;  %v1851_v11 = vadd.f32 %v1850_v37, %v4163_v53  ;;  %v3390_v3 = vld [vmem:[#allocation2 + $0x28c] sm:$0xf]  ;;  %v3083_v18 = vld [vmem:[#allocation2 + $0x298] sm:$0xf0] }
 0x1cf   : > { %2233 = vmatpush.bf16.msra.mxu0 %v2846_v15  ;;  %v3326_v15 = vld [vmem:[#allocation2 + $0x8c] sm:$0xf] }
 0x1d0   : > { %2380 = vmatpush.bf16.msra.mxu3 %v3230_v16  ;;  %v1900_v43 = vadd.f32 %v1899_v42, %v1851_v11 }
 0x1d1   : > { %v1946_v28 = vpop.f32.mrf.mxu2  ;;  %v1995_v9 = vpop.f32.mrf.mxu3 }
 0x1d2   : > { %v1947_v46 = vadd.f32 %v1946_v28, %v1898_v27  ;;  %v3362_v27 = vld [vmem:[#allocation2 + $0x1ac] sm:$0xf] }
 0x1d3   : > { %v2974_v45 = vor.u32 %v3362_v27, %v2971_v56 }
 0x1d4   : > { %v1996_v14 = vadd.f32 %v1995_v9, %v1947_v46  ;;  %v1853_v52 = vpop.f32.mrf.mxu0  ;;  %v1902_v54 = vpop.f32.mrf.mxu1  ;;  %v3086_v9 = vor.u32 %v3390_v3, %v3083_v18 }
 0x1d5   : > { %2282 = vmatpush.bf16.msra.mxu1 %v2974_v45  ;;  %v1854_v16 = vadd.f32 %v1853_v52, %v4163_v53 }
 0x1d6   : > { %v2427_v35 = vpack.c.bf16 %v1996_v14, %v4089_v51  ;;  %2332 = vmatpush.bf16.msra.mxu2 %v3086_v9 }
 0x1d7   : > { %2048 = vmatmul.bf16.gmra.mxu0 %v3941_v38  ;;  %2097 = vmatmul.bf16.gmra.mxu1 %v3943_v40  ;;  %v1903_v42 = vadd.f32 %v1902_v54, %v1854_v16 }
 0x1d8   : > { %2459 = vst [vmem:[%s4177_s12] sm:$0xff] %v2427_v35  ;;  %v2827_v35 = vld [vmem:[#allocation2 + $0x98] sm:$0xf0] }
 0x1d9   : > { %v1948_v37 = vpop.f32.mrf.mxu2  ;;  %v1997_v41 = vpop.f32.mrf.mxu3  ;;  %v2830_v56 = vor.u32 %v3326_v15, %v2827_v35 }
 0x1da   : > { %v1949_v28 = vadd.f32 %v1948_v37, %v1900_v43  ;;  %v3422_v43 = vld [vmem:[#allocation2 + $0x38c] sm:$0xf]  ;;  %v3211_v37 = vld [vmem:[#allocation2 + $0x398] sm:$0xf0] }
 0x1db   : > { %2234 = vmatpush.bf16.msra.mxu0 %v2830_v56 }
 0x1dc   : > { %v1998_v14 = vadd.f32 %v1997_v41, %v1949_v28  ;;  %v1855_v51 = vpop.f32.mrf.mxu0  ;;  %v1904_v34 = vpop.f32.mrf.mxu1 }
 0x1dd   : > { %v1856_v45 = vadd.f32 %v1855_v51, %v4163_v53 }
 0x1de   : > { %v2429_v11 = vpack.c.bf16 %v1998_v14, %v4094_v5  ;;  %2146 = vmatmul.bf16.gmra.mxu2 %v3951_v1  ;;  %2195 = vmatmul.bf16.gmra.mxu3 %v3953_v2  ;;  %v3214_v5 = vor.u32 %v3422_v43, %v3211_v37 }
 0x1df   : > { %v1905_v14 = vadd.f32 %v1904_v34, %v1856_v45  ;;  %v2811_v45 = vld [vmem:[#allocation2 + $0x78] sm:$0xf0] }
 0x1e0   : > { %2461 = vst [vmem:[%s4177_s12 + $0x10] sm:$0xff] %v2429_v11  ;;  %2381 = vmatpush.bf16.msra.mxu3 %v3214_v5  ;;  %v3358_v11 = vld [vmem:[#allocation2 + $0x18c] sm:$0xf] }
 0x1e1   : > { %v1951_v46 = vpop.f32.mrf.mxu2  ;;  %v2000_v27 = vpop.f32.mrf.mxu3  ;;  %v3322_v5 = vld [vmem:[#allocation2 + $0x6c] sm:$0xf] }
 0x1e2   : > { %v1952_v52 = vadd.f32 %v1951_v46, %v1903_v42  ;;  %v2955_v42 = vld [vmem:[#allocation2 + $0x198] sm:$0xf0] }
 0x1e3   : > { %v2958_v18 = vor.u32 %v3358_v11, %v2955_v42  ;;  %v3195_v11 = vld [vmem:[#allocation2 + $0x378] sm:$0xf0] }
 0x1e4   : > { %v2001_v28 = vadd.f32 %v2000_v27, %v1952_v52  ;;  %v1858_v41 = vpop.f32.mrf.mxu0  ;;  %v1907_v54 = vpop.f32.mrf.mxu1  ;;  %v3386_v52 = vld [vmem:[#allocation2 + $0x26c] sm:$0xf]  ;;  %v3067_v27 = vld [vmem:[#allocation2 + $0x278] sm:$0xf0] }
 0x1e5   : > { %2283 = vmatpush.bf16.msra.mxu1 %v2958_v18  ;;  %v1859_v9 = vadd.f32 %v1858_v41, %v4163_v53  ;;  %v3070_v37 = vor.u32 %v3386_v52, %v3067_v27 }
 0x1e6   : > { %v2431_v16 = vpack.c.bf16 %v2001_v28, %v4099_v29  ;;  %v3418_v28 = vld [vmem:[#allocation2 + $0x36c] sm:$0xf] }
 0x1e7   : > { %2053 = vmatmul.bf16.gmra.mxu0 %v3961_v30  ;;  %2102 = vmatmul.bf16.gmra.mxu1 %v3963_v32  ;;  %v1908_v34 = vadd.f32 %v1907_v54, %v1859_v9  ;;  %v3354_v9 = vld [vmem:[#allocation2 + $0x16c] sm:$0xf] }
 0x1e8   : > { %2463 = vst [vmem:[%s4177_s12 + $0x20] sm:$0xff] %v2431_v16  ;;  %2333 = vmatpush.bf16.msra.mxu2 %v3070_v37 }
 0x1e9   : > { %v1953_v3 = vpop.f32.mrf.mxu2  ;;  %v2002_v51 = vpop.f32.mrf.mxu3 }
 0x1ea   : > { %v1954_v46 = vadd.f32 %v1953_v3, %v1905_v14  ;;  %v2814_v14 = vor.u32 %v3322_v5, %v2811_v45  ;;  %v3382_v45 = vld [vmem:[#allocation2 + $0x24c] sm:$0xf] }
 0x1ec   : > { %v2003_v15 = vadd.f32 %v2002_v51, %v1954_v46  ;;  %v1860_v35 = vpop.f32.mrf.mxu0  ;;  %v1909_v43 = vpop.f32.mrf.mxu1  ;;  %2235 = vmatpush.bf16.msra.mxu0 %v2814_v14  ;;  %v3318_v14 = vld [vmem:[#allocation2 + $0x4c] sm:$0xf] }
 0x1ed   : > { %v1861_v42 = vadd.f32 %v1860_v35, %v4163_v53 }
 0x1ee   : > { %v2433_v29 = vpack.c.bf16 %v2003_v15, %v4104_v12  ;;  %2151 = vmatmul.bf16.gmra.mxu2 %v3971_v59  ;;  %2200 = vmatmul.bf16.gmra.mxu3 %v3973_v60  ;;  %v3198_v12 = vor.u32 %v3418_v28, %v3195_v11  ;;  %v2939_v15 = vld [vmem:[#allocation2 + $0x178] sm:$0xf0] }
 0x1ef   : > { %v1910_v51 = vadd.f32 %v1909_v43, %v1861_v42  ;;  %v3051_v28 = vld [vmem:[#allocation2 + $0x258] sm:$0xf0] }
 0x1f0   : > { %2465 = vst [vmem:[%s4177_s12 + $0x30] sm:$0xff] %v2433_v29  ;;  %2382 = vmatpush.bf16.msra.mxu3 %v3198_v12  ;;  %v2795_v11 = vld [vmem:[#allocation2 + $0x58] sm:$0xf0]  ;;  %v3414_v12 = vld [vmem:[#allocation2 + $0x34c] sm:$0xf] }
 0x1f1   : > { %v1956_v56 = vpop.f32.mrf.mxu2  ;;  %v2005_v16 = vpop.f32.mrf.mxu3 }
 0x1f2   : > { %v1957_v41 = vadd.f32 %v1956_v56, %v1908_v34  ;;  %v2942_v34 = vor.u32 %v3354_v9, %v2939_v15 }
 0x1f4   : > { %v2006_v3 = vadd.f32 %v2005_v16, %v1957_v41  ;;  %v1863_v18 = vpop.f32.mrf.mxu0  ;;  %v1912_v54 = vpop.f32.mrf.mxu1  ;;  %2284 = vmatpush.bf16.msra.mxu1 %v2942_v34  ;;  %v3054_v16 = vor.u32 %v3382_v45, %v3051_v28 }
 0x1f5   : > { %v1864_v27 = vadd.f32 %v1863_v18, %v4163_v53  ;;  %v2798_v18 = vor.u32 %v3318_v14, %v2795_v11  ;;  %v3035_v14 = vld [vmem:[#allocation2 + $0x238] sm:$0xf0] }
 0x1f6   : > { %v2435_v46 = vpack.c.bf16 %v2006_v3, %v4109_v49  ;;  %2334 = vmatpush.bf16.msra.mxu2 %v3054_v16  ;;  %v3378_v16 = vld [vmem:[#allocation2 + $0x22c] sm:$0xf] }
 0x1f7   : > { %2058 = vmatmul.bf16.gmra.mxu0 %v3981_v24  ;;  %2107 = vmatmul.bf16.gmra.mxu1 %v3983_v26  ;;  %v1913_v43 = vadd.f32 %v1912_v54, %v1864_v27 }
 0x1f8   : > { %2467 = vst [vmem:[%s4177_s12 + $0x40] sm:$0xff] %v2435_v46  ;;  %v3179_v46 = vld [vmem:[#allocation2 + $0x358] sm:$0xf0]  ;;  %2236 = vmatpush.bf16.msra.mxu0 %v2798_v18  ;;  %v3410_v18 = vld [vmem:[#allocation2 + $0x32c] sm:$0xf] }
 0x1f9   : > { %v1958_v29 = vpop.f32.mrf.mxu2  ;;  %v2007_v35 = vpop.f32.mrf.mxu3 }
 0x1fa   : > { %v1959_v52 = vadd.f32 %v1958_v29, %v1910_v51 }
 0x1fc   : > { %v2008_v56 = vadd.f32 %v2007_v35, %v1959_v52  ;;  %v1865_v37 = vpop.f32.mrf.mxu0  ;;  %v1914_v5 = vpop.f32.mrf.mxu1  ;;  %v3350_v52 = vld [vmem:[#allocation2 + $0x14c] sm:$0xf]  ;;  %v2923_v35 = vld [vmem:[#allocation2 + $0x158] sm:$0xf0] }
 0x1fd   : > { %v1866_v51 = vadd.f32 %v1865_v37, %v4163_v53 }
 0x1fe   : > { %v2437_v49 = vpack.c.bf16 %v2008_v56, %v4114_v13  ;;  %2156 = vmatmul.bf16.gmra.mxu2 %v3991_v57  ;;  %2205 = vmatmul.bf16.gmra.mxu3 %v3993_v58  ;;  %v3182_v13 = vor.u32 %v3414_v12, %v3179_v46  ;;  %v2926_v56 = vor.u32 %v3350_v52, %v2923_v35 }
 0x1ff   : > { %v1915_v34 = vadd.f32 %v1914_v5, %v1866_v51  ;;  %v3038_v12 = vor.u32 %v3378_v16, %v3035_v14  ;;  %v3374_v14 = vld [vmem:[#allocation2 + $0x20c] sm:$0xf] }
 0x200   : > { %2469 = vst [vmem:[%s4177_s12 + $0x50] sm:$0xff] %v2437_v49  ;;  %2383 = vmatpush.bf16.msra.mxu3 %v3182_v13  ;;  %2285 = vmatpush.bf16.msra.mxu1 %v2926_v56  ;;  %v2907_v56 = vld [vmem:[#allocation2 + $0x138] sm:$0xf0] }
 0x201   : > { %v1961_v41 = vpop.f32.mrf.mxu2  ;;  %v2010_v3 = vpop.f32.mrf.mxu3  ;;  %2335 = vmatpush.bf16.msra.mxu2 %v3038_v12 }
 0x202   : > { %v1962_v42 = vadd.f32 %v1961_v41, %v1913_v43 }
 0x204   : > { %v2011_v9 = vadd.f32 %v2010_v3, %v1962_v42  ;;  %v1868_v15 = vpop.f32.mrf.mxu0  ;;  %v1917_v54 = vpop.f32.mrf.mxu1  ;;  %v3314_v42 = vld [vmem:[#allocation2 + $0x2c] sm:$0xf]  ;;  %v2779_v3 = vld [vmem:[#allocation2 + $0x38] sm:$0xf0] }
 0x205   : > { %v1869_v43 = vadd.f32 %v1868_v15, %v4163_v53  ;;  %v2782_v51 = vor.u32 %v3314_v42, %v2779_v3  ;;  %v3310_v3 = vld [vmem:[#allocation2 + $0xc] sm:$0xf] }
 0x206   : > { %v2439_v29 = vpack.c.bf16 %v2011_v9, %v4119_v55  ;;  %v3163_v9 = vld [vmem:[#allocation2 + $0x338] sm:$0xf0] }
 0x207   : > { %2063 = vmatmul.bf16.gmra.mxu0 %v4001_v25  ;;  %2112 = vmatmul.bf16.gmra.mxu1 %v4003_v31  ;;  %v1918_v5 = vadd.f32 %v1917_v54, %v1869_v43 }
 0x208   : > { %2471 = vst [vmem:[%s4177_s12 + $0x60] sm:$0xff] %v2439_v29  ;;  %2237 = vmatpush.bf16.msra.mxu0 %v2782_v51 }
 0x209   : > { %v1963_v27 = vpop.f32.mrf.mxu2  ;;  %v2012_v37 = vpop.f32.mrf.mxu3 }
 0x20a   : > { %v1964_v49 = vadd.f32 %v1963_v27, %v1915_v34  ;;  %v3346_v27 = vld [vmem:[#allocation2 + $0x12c] sm:$0xf] }
 0x20c   : > { %v2013_v45 = vadd.f32 %v2012_v37, %v1964_v49  ;;  %v1870_v28 = vpop.f32.mrf.mxu0  ;;  %v1919_v41 = vpop.f32.mrf.mxu1  ;;  %v2910_v37 = vor.u32 %v3346_v27, %v2907_v56 }
 0x20d   : > { %v1871_v15 = vadd.f32 %v1870_v28, %v4163_v53 }
 0x20e   : > { %v2441_v55 = vpack.c.bf16 %v2013_v45, %v4124_v22  ;;  %2161 = vmatmul.bf16.gmra.mxu2 %v4011_v63  ;;  %2210 = vmatmul.bf16.gmra.mxu3 %v4013_v0  ;;  %v3166_v22 = vor.u32 %v3410_v18, %v3163_v9  ;;  %v2763_v18 = vld [vmem:[#allocation2 + $0x18] sm:$0xf0] }
 0x20f   : > { %v1920_v35 = vadd.f32 %v1919_v41, %v1871_v15  ;;  %2286 = vmatpush.bf16.msra.mxu1 %v2910_v37  ;;  %v2766_v9 = vor.u32 %v3310_v3, %v2763_v18  ;;  %v3342_v15 = vld [vmem:[#allocation2 + $0x10c] sm:$0xf] }
 0x210   : > { %2473 = vst [vmem:[%s4177_s12 + $0x70] sm:$0xff] %v2441_v55  ;;  %2384 = vmatpush.bf16.msra.mxu3 %v3166_v22  ;;  %v3147_v22 = vld [vmem:[#allocation2 + $0x318] sm:$0xf0] }
 0x211   : > { %v1966_v11 = vpop.f32.mrf.mxu2  ;;  %v2015_v13 = vpop.f32.mrf.mxu3  ;;  %2238 = vmatpush.bf16.msra.mxu0 %v2766_v9 }
 0x212   : > { %v1967_v46 = vadd.f32 %v1966_v11, %v1918_v5  ;;  %v3019_v11 = vld [vmem:[#allocation2 + $0x218] sm:$0xf0] }
 0x213   : > { %v3022_v42 = vor.u32 %v3374_v14, %v3019_v11 }
 0x214   : > { %v2016_v29 = vadd.f32 %v2015_v13, %v1967_v46  ;;  %v1873_v34 = vpop.f32.mrf.mxu0  ;;  %v1922_v54 = vpop.f32.mrf.mxu1  ;;  %v3406_v46 = vld [vmem:[#allocation2 + $0x30c] sm:$0xf] }
 0x215   : > { %v1874_v28 = vadd.f32 %v1873_v34, %v4163_v53  ;;  %2336 = vmatpush.bf16.msra.mxu2 %v3022_v42 }
 0x216   : > { %v2443_v52 = vpack.c.bf16 %v2016_v29, %v4129_v17  ;;  %v2891_v29 = vld [vmem:[#allocation2 + $0x118] sm:$0xf0] }
 0x217   : > { %2068 = vmatmul.bf16.gmra.mxu0 %v4021_v36  ;;  %2117 = vmatmul.bf16.gmra.mxu1 %v4023_v39  ;;  %v1923_v41 = vadd.f32 %v1922_v54, %v1874_v28 }
 0x218   : > { %2475 = vst [vmem:[%s4177_s12 + $0x80] sm:$0xff] %v2443_v52 }
 0x219   : > { %v1968_v49 = vpop.f32.mrf.mxu2  ;;  %v2017_v45 = vpop.f32.mrf.mxu3 }
 0x21a   : > { %v1969_v43 = vadd.f32 %v1968_v49, %v1920_v35  ;;  %v2894_v35 = vor.u32 %v3342_v15, %v2891_v29 }
 0x21c   : > { %v2018_v55 = vadd.f32 %v2017_v45, %v1969_v43  ;;  %v1875_v5 = vpop.f32.mrf.mxu0  ;;  %v1924_v16 = vpop.f32.mrf.mxu1  ;;  %2287 = vmatpush.bf16.msra.mxu1 %v2894_v35  ;;  %v4249_v35 = vld [vmem:[%s4428_s4] sm:$0xf] }
 0x21d   : > { %v1876_v34 = vadd.f32 %v1875_v5, %v4163_v53 }
 0x21e   : > { %v2445_v17 = vpack.c.bf16 %v2018_v55, %v4134_v21  ;;  %2166 = vmatmul.bf16.gmra.mxu2 %v4031_v10  ;;  %2215 = vmatmul.bf16.gmra.mxu3 %v4033_v8  ;;  %v3150_v21 = vor.u32 %v3406_v46, %v3147_v22 }
 0x21f   : > { %v1925_v49 = vadd.f32 %v1924_v16, %v1876_v34 }
 0x220   : > { %2477 = vst [vmem:[%s4177_s12 + $0x90] sm:$0xff] %v2445_v17  ;;  %2385 = vmatpush.bf16.msra.mxu3 %v3150_v21 }
 0x221   : > { %v1971_v12 = vpop.f32.mrf.mxu2  ;;  %v2020_v51 = vpop.f32.mrf.mxu3 }
 0x222   : > { %v1972_v13 = vadd.f32 %v1971_v12, %v1923_v41 }
 0x224   : > { %v2021_v54 = vadd.f32 %v2020_v51, %v1972_v13  ;;  %v1878_v52 = vpop.f32.mrf.mxu0  ;;  %v1927_v27 = vpop.f32.mrf.mxu1 }
 0x225   : > { %v1879_v28 = vadd.f32 %v1878_v52, %v4163_v53 }
 0x226   : > { %v2447_v56 = vpack.c.bf16 %v2021_v54, %v4139_v44  ;;  %v4443_v44 = vld [vmem:[#allocation11_spill] sm:$0xff] }
 0x227   : > { %2073 = vmatmul.bf16.gmra.mxu0 %v4041_v61  ;;  %2122 = vmatmul.bf16.gmra.mxu1 %v4043_v4  ;;  %v1928_v14 = vadd.f32 %v1927_v27, %v1879_v28  ;;  %v4252_v27 = vperm.slane %v4249_v35, 2 }
 0x228   : > { %2479 = vst [vmem:[%s4177_s12 + $0xa0] sm:$0xff] %v2447_v56 }
 0x229   : > { %v1973_v37 = vpop.f32.mrf.mxu2  ;;  %v2022_v45 = vpop.f32.mrf.mxu3 }
 0x22a   : > { %v1974_v43 = vadd.f32 %v1973_v37, %v1925_v49 }
 0x22c   : > { %v2023_v55 = vadd.f32 %v2022_v45, %v1974_v43  ;;  %v1880_v5 = vpop.f32.mrf.mxu0  ;;  %v1929_v17 = vpop.f32.mrf.mxu1 }
 0x22d   : > { %v1881_v42 = vadd.f32 %v1880_v5, %v4163_v53 }
 0x22e   : > { %v2449_v41 = vpack.c.bf16 %v2023_v55, %v4144_v6  ;;  %2171 = vmatmul.bf16.gmra.mxu2 %v4051_v33  ;;  %2220 = vmatmul.bf16.gmra.mxu3 %v4443_v44 }
 0x22f   : > { %v1930_v6 = vadd.f32 %v1929_v17, %v1881_v42 }
 0x230   : > { %2481 = vst [vmem:[%s4177_s12 + $0xb0] sm:$0xff] %v2449_v41  ;;  %v4444_v41 = vld [vmem:[#allocation8_spill] sm:$0xff] }
 0x231   : > { %v1976_v16 = vpop.f32.mrf.mxu2  ;;  %v2025_v12 = vpop.f32.mrf.mxu3 }
 0x232   : > { %v1977_v11 = vadd.f32 %v1976_v16, %v1928_v14 }
 0x234   : > { %v2026_v3 = vadd.f32 %v2025_v12, %v1977_v11  ;;  %v1883_v18 = vpop.f32.mrf.mxu0  ;;  %v1932_v46 = vpop.f32.mrf.mxu1 }
 0x235   : > { %v1884_v21 = vadd.f32 %v1883_v18, %v4163_v53  ;;  %v4445_v18 = vld [vmem:[#allocation12_spill] sm:$0xff] }
 0x236   : > { %v2451_v13 = vpack.c.bf16 %v2026_v3, %v4149_v7 }
 0x237   : > { %2078 = vmatmul.bf16.gmra.mxu0 %v4061_v20  ;;  %2127 = vmatmul.bf16.gmra.mxu1 %v4063_v23  ;;  %v1933_v7 = vadd.f32 %v1932_v46, %v1884_v21 }
 0x238   : > { %2483 = vst [vmem:[%s4177_s12 + $0xc0] sm:$0xff] %v2451_v13  ;;  %v4446_v13 = vld [vmem:[#allocation9_spill] sm:$0xff] }
 0x239   : > { %v1978_v51 = vpop.f32.mrf.mxu2  ;;  %v2027_v22 = vpop.f32.mrf.mxu3 }
 0x23a   : > { %v1979_v9 = vadd.f32 %v1978_v51, %v1930_v6  ;;  %v4447_v6 = vld [vmem:[#allocation10_spill] sm:$0xff] }
 0x23c   : > { %v2028_v15 = vadd.f32 %v2027_v22, %v1979_v9  ;;  %v1885_v29 = vpop.f32.mrf.mxu0  ;;  %v1934_v34 = vpop.f32.mrf.mxu1 }
 0x23e   : > { %v2453_v54 = vpack.c.bf16 %v2028_v15, %v4154_v19  ;;  %2176 = vmatmul.bf16.gmra.mxu2 %v4069_v47  ;;  %2225 = vmatmul.bf16.gmra.mxu3 %v4071_v48  ;;  %v1886_v19 = vadd.f32 %v1885_v29, %v4163_v53 }
 0x240   : > { %2485 = vst [vmem:[%s4177_s12 + $0xd0] sm:$0xff] %v2453_v54  ;;  %v1935_v17 = vadd.f32 %v1934_v34, %v1886_v19 }
 0x241   : > { %v1981_v52 = vpop.f32.mrf.mxu2  ;;  %v2030_v49 = vpop.f32.mrf.mxu3 }
 0x242   : > { %v1982_v56 = vadd.f32 %v1981_v52, %v1933_v7 }
 0x244   : > { %v2031_v37 = vadd.f32 %v2030_v49, %v1982_v56  ;;  %v2044_v43 = vpop.f32.mrf.mxu0  ;;  %v2093_v28 = vpop.f32.mrf.mxu1 }
 0x245   : > { %v2045_v45 = vadd.f32 %v2044_v43, %v4252_v27 }
 0x246   : > { %v2455_v55 = vpack.c.bf16 %v2031_v37, %v4159_v62 }
 0x247   : > { %v2094_v5 = vadd.f32 %v2093_v28, %v2045_v45  ;;  %2239 = vmatmul.bf16.vlgmr.msra.gmra.mxu0 %v3921_v50  ;;  %2288 = vmatmul.bf16.vlgmr.msra.gmra.mxu1 %v4444_v41 }
 0x248   : > { %2487 = vst [vmem:[%s4177_s12 + $0xe0] sm:$0xff] %v2455_v55 }
 0x249   : > { %v1983_v14 = vpop.f32.mrf.mxu2  ;;  %v2032_v11 = vpop.f32.mrf.mxu3 }
 0x24a   : > { %v1984_v16 = vadd.f32 %v1983_v14, %v1935_v17 }
 0x24c   : > { %v2033_v12 = vadd.f32 %v2032_v11, %v1984_v16  ;;  %v2046_v53 = vpop.f32.mrf.mxu0  ;;  %v2095_v3 = vpop.f32.mrf.mxu1 }
 0x24d   : > { %v2047_v42 = vadd.f32 %v2046_v53, %v4252_v27 }
 0x24e   : > { %v2457_v46 = vpack.c.bf16 %v2033_v12, %v4445_v18  ;;  %2337 = vmatmul.bf16.vlgmr.msra.gmra.mxu2 %v4446_v13  ;;  %2386 = vmatmul.bf16.vlgmr.msra.gmra.mxu3 %v4447_v6 }
 0x24f   : > { %v2096_v62 = vadd.f32 %v2095_v3, %v2047_v42 }
 0x250   : > { %2489 = vst [vmem:[%s4177_s12 + $0xf0] sm:$0xff] %v2457_v46 }
 0x251   : > { %v2142_v50 = vpop.f32.mrf.mxu2  ;;  %v2191_v9 = vpop.f32.mrf.mxu3 }
 0x252   : > { %v2143_v51 = vadd.f32 %v2142_v50, %v2094_v5 }
 0x254   : > { %v4265_v22 = vadd.f32 %v2191_v9, %v2143_v51  ;;  %v2049_v21 = vpop.f32.mrf.mxu0  ;;  %v2098_v29 = vpop.f32.mrf.mxu1 }
 0x255   : > { %v2050_v15 = vadd.f32 %v2049_v21, %v4252_v27 }
 0x257   : > { %v2099_v34 = vadd.f32 %v2098_v29, %v2050_v15  ;;  %2244 = vmatmul.bf16.gmra.mxu0 %v3941_v38  ;;  %2293 = vmatmul.bf16.gmra.mxu1 %v3943_v40 }
 0x259   : > { %v2144_v54 = vpop.f32.mrf.mxu2  ;;  %v2193_v52 = vpop.f32.mrf.mxu3 }
 0x25a   : > { %v2145_v7 = vadd.f32 %v2144_v54, %v2096_v62 }
 0x25c   : > { %v4270_v56 = vadd.f32 %v2193_v52, %v2145_v7  ;;  %v2051_v49 = vpop.f32.mrf.mxu0  ;;  %v2100_v37 = vpop.f32.mrf.mxu1 }
 0x25d   : > { %v2052_v19 = vadd.f32 %v2051_v49, %v4252_v27 }
 0x25e   : > { %2342 = vmatmul.bf16.gmra.mxu2 %v3951_v1  ;;  %2391 = vmatmul.bf16.gmra.mxu3 %v3953_v2 }
 0x25f   : > { %v2101_v43 = vadd.f32 %v2100_v37, %v2052_v19 }
 0x261   : > { %v2147_v45 = vpop.f32.mrf.mxu2  ;;  %v2196_v55 = vpop.f32.mrf.mxu3 }
 0x262   : > { %v2148_v28 = vadd.f32 %v2147_v45, %v2099_v34 }
 0x264   : > { %v4275_v38 = vadd.f32 %v2196_v55, %v2148_v28  ;;  %v2054_v40 = vpop.f32.mrf.mxu0  ;;  %v2103_v17 = vpop.f32.mrf.mxu1 }
 0x265   : > { %v2055_v5 = vadd.f32 %v2054_v40, %v4252_v27 }
 0x267   : > { %v2104_v41 = vadd.f32 %v2103_v17, %v2055_v5  ;;  %2249 = vmatmul.bf16.gmra.mxu0 %v3961_v30  ;;  %2298 = vmatmul.bf16.gmra.mxu1 %v3963_v32 }
 0x269   : > { %v2149_v14 = vpop.f32.mrf.mxu2  ;;  %v2198_v1 = vpop.f32.mrf.mxu3 }
 0x26a   : > { %v2150_v16 = vadd.f32 %v2149_v14, %v2101_v43 }
 0x26c   : > { %v4280_v11 = vadd.f32 %v2198_v1, %v2150_v16  ;;  %v2056_v2 = vpop.f32.mrf.mxu0  ;;  %v2105_v53 = vpop.f32.mrf.mxu1 }
 0x26d   : > { %v2057_v12 = vadd.f32 %v2056_v2, %v4252_v27 }
 0x26e   : > { %2347 = vmatmul.bf16.gmra.mxu2 %v3971_v59  ;;  %2396 = vmatmul.bf16.gmra.mxu3 %v3973_v60 }
 0x26f   : > { %v2106_v42 = vadd.f32 %v2105_v53, %v2057_v12 }
 0x271   : > { %v2152_v3 = vpop.f32.mrf.mxu2  ;;  %v2201_v46 = vpop.f32.mrf.mxu3 }
 0x272   : > { %v2153_v18 = vadd.f32 %v2152_v3, %v2104_v41 }
 0x274   : > { %v4285_v30 = vadd.f32 %v2201_v46, %v2153_v18  ;;  %v2059_v32 = vpop.f32.mrf.mxu0  ;;  %v2108_v62 = vpop.f32.mrf.mxu1 }
 0x275   : > { %v2060_v13 = vadd.f32 %v2059_v32, %v4252_v27 }
 0x277   : > { %v2109_v6 = vadd.f32 %v2108_v62, %v2060_v13  ;;  %2254 = vmatmul.bf16.gmra.mxu0 %v3981_v24  ;;  %2303 = vmatmul.bf16.gmra.mxu1 %v3983_v26 }
 0x279   : > { %v2154_v50 = vpop.f32.mrf.mxu2  ;;  %v2203_v59 = vpop.f32.mrf.mxu3 }
 0x27a   : > { %v2155_v51 = vadd.f32 %v2154_v50, %v2106_v42 }
 0x27c   : > { %v4290_v9 = vadd.f32 %v2203_v59, %v2155_v51  ;;  %v2061_v60 = vpop.f32.mrf.mxu0  ;;  %v2110_v15 = vpop.f32.mrf.mxu1 }
 0x27d   : > { %v2062_v21 = vadd.f32 %v2061_v60, %v4252_v27 }
 0x27e   : > { %2352 = vmatmul.bf16.gmra.mxu2 %v3991_v57  ;;  %2401 = vmatmul.bf16.gmra.mxu3 %v3993_v58 }
 0x27f   : > { %v2111_v29 = vadd.f32 %v2110_v15, %v2062_v21 }
 0x281   : > { %v2157_v34 = vpop.f32.mrf.mxu2  ;;  %v2206_v7 = vpop.f32.mrf.mxu3 }
 0x282   : > { %v2158_v54 = vadd.f32 %v2157_v34, %v2109_v6 }
 0x284   : > { %v4295_v24 = vadd.f32 %v2206_v7, %v2158_v54  ;;  %v2064_v26 = vpop.f32.mrf.mxu0  ;;  %v2113_v49 = vpop.f32.mrf.mxu1 }
 0x285   : > { %v2065_v52 = vadd.f32 %v2064_v26, %v4252_v27 }
 0x287   : > { %v2114_v19 = vadd.f32 %v2113_v49, %v2065_v52  ;;  %2259 = vmatmul.bf16.gmra.mxu0 %v4001_v25  ;;  %2308 = vmatmul.bf16.gmra.mxu1 %v4003_v31 }
 0x289   : > { %v2159_v37 = vpop.f32.mrf.mxu2  ;;  %v2208_v57 = vpop.f32.mrf.mxu3 }
 0x28a   : > { %v2160_v43 = vadd.f32 %v2159_v37, %v2111_v29 }
 0x28c   : > { %v4300_v45 = vadd.f32 %v2208_v57, %v2160_v43  ;;  %v2066_v58 = vpop.f32.mrf.mxu0  ;;  %v2115_v55 = vpop.f32.mrf.mxu1 }
 0x28d   : > { %v2067_v28 = vadd.f32 %v2066_v58, %v4252_v27 }
 0x28e   : > { %2357 = vmatmul.bf16.gmra.mxu2 %v4011_v63  ;;  %2406 = vmatmul.bf16.gmra.mxu3 %v4013_v0 }
 0x28f   : > { %v2116_v40 = vadd.f32 %v2115_v55, %v2067_v28 }
 0x291   : > { %v2162_v5 = vpop.f32.mrf.mxu2  ;;  %v2211_v41 = vpop.f32.mrf.mxu3 }
 0x292   : > { %v2163_v17 = vadd.f32 %v2162_v5, %v2114_v19 }
 0x294   : > { %v4305_v25 = vadd.f32 %v2211_v41, %v2163_v17  ;;  %v2069_v31 = vpop.f32.mrf.mxu0  ;;  %v2118_v16 = vpop.f32.mrf.mxu1  ;;  %v4338_v41 = vperm.slane %v4249_v35, 3 }
 0x295   : > { %v2070_v14 = vadd.f32 %v2069_v31, %v4252_v27 }
 0x297   : > { %v2119_v1 = vadd.f32 %v2118_v16, %v2070_v14  ;;  %2264 = vmatmul.bf16.gmra.mxu0 %v4021_v36  ;;  %2313 = vmatmul.bf16.gmra.mxu1 %v4023_v39 }
 0x299   : > { %v2164_v2 = vpop.f32.mrf.mxu2  ;;  %v2213_v63 = vpop.f32.mrf.mxu3 }
 0x29a   : > { %v2165_v12 = vadd.f32 %v2164_v2, %v2116_v40 }
 0x29c   : > { %v4310_v53 = vadd.f32 %v2213_v63, %v2165_v12  ;;  %v2071_v0 = vpop.f32.mrf.mxu0  ;;  %v2120_v3 = vpop.f32.mrf.mxu1 }
 0x29d   : > { %v2072_v42 = vadd.f32 %v2071_v0, %v4252_v27 }
 0x29e   : > { %2362 = vmatmul.bf16.gmra.mxu2 %v4031_v10  ;;  %2411 = vmatmul.bf16.gmra.mxu3 %v4033_v8 }
 0x29f   : > { %v2121_v18 = vadd.f32 %v2120_v3, %v2072_v42 }
 0x2a1   : > { %v2167_v46 = vpop.f32.mrf.mxu2  ;;  %v2216_v13 = vpop.f32.mrf.mxu3 }
 0x2a2   : > { %v2168_v32 = vadd.f32 %v2167_v46, %v2119_v1 }
 0x2a4   : > { %v4315_v36 = vadd.f32 %v2216_v13, %v2168_v32  ;;  %v2074_v39 = vpop.f32.mrf.mxu0  ;;  %v2123_v6 = vpop.f32.mrf.mxu1 }
 0x2a5   : > { %v2075_v62 = vadd.f32 %v2074_v39, %v4252_v27 }
 0x2a7   : > { %v2124_v50 = vadd.f32 %v2123_v6, %v2075_v62  ;;  %2269 = vmatmul.bf16.gmra.mxu0 %v4041_v61  ;;  %2318 = vmatmul.bf16.gmra.mxu1 %v4043_v4 }
 0x2a9   : > { %v2169_v51 = vpop.f32.mrf.mxu2  ;;  %v2218_v10 = vpop.f32.mrf.mxu3 }
 0x2aa   : > { %v2170_v59 = vadd.f32 %v2169_v51, %v2121_v18 }
 0x2ac   : > { %v4320_v60 = vadd.f32 %v2218_v10, %v2170_v59  ;;  %v2076_v8 = vpop.f32.mrf.mxu0  ;;  %v2125_v15 = vpop.f32.mrf.mxu1 }
 0x2ad   : > { %v2077_v21 = vadd.f32 %v2076_v8, %v4252_v27 }
 0x2ae   : > { %2367 = vmatmul.bf16.gmra.mxu2 %v4051_v33  ;;  %2416 = vmatmul.bf16.gmra.mxu3 %v4443_v44 }
 0x2af   : > { %v2126_v29 = vadd.f32 %v2125_v15, %v2077_v21 }
 0x2b1   : > { %v2172_v34 = vpop.f32.mrf.mxu2  ;;  %v2221_v7 = vpop.f32.mrf.mxu3 }
 0x2b2   : > { %v2173_v54 = vadd.f32 %v2172_v34, %v2124_v50 }
 0x2b4   : > { %v4325_v61 = vadd.f32 %v2221_v7, %v2173_v54  ;;  %v2079_v4 = vpop.f32.mrf.mxu0  ;;  %v2128_v52 = vpop.f32.mrf.mxu1 }
 0x2b5   : > { %v2080_v26 = vadd.f32 %v2079_v4, %v4252_v27 }
 0x2b7   : > { %v2129_v49 = vadd.f32 %v2128_v52, %v2080_v26  ;;  %2274 = vmatmul.bf16.gmra.mxu0 %v4061_v20  ;;  %2323 = vmatmul.bf16.gmra.mxu1 %v4063_v23 }
 0x2b9   : > { %v2174_v19 = vpop.f32.mrf.mxu2  ;;  %v2223_v33 = vpop.f32.mrf.mxu3 }
 0x2ba   : > { %v2175_v37 = vadd.f32 %v2174_v19, %v2126_v29 }
 0x2bc   : > { %v4330_v43 = vadd.f32 %v2223_v33, %v2175_v37  ;;  %v2081_v44 = vpop.f32.mrf.mxu0  ;;  %v2130_v58 = vpop.f32.mrf.mxu1 }
 0x2bd   : > { %v2082_v57 = vadd.f32 %v2081_v44, %v4252_v27 }
 0x2be   : > { %2372 = vmatmul.bf16.gmra.mxu2 %v4069_v47  ;;  %2421 = vmatmul.bf16.gmra.mxu3 %v4071_v48 }
 0x2bf   : > { %v2131_v28 = vadd.f32 %v2130_v58, %v2082_v57 }
 0x2c1   : > { %v2177_v55 = vpop.f32.mrf.mxu2  ;;  %v2226_v5 = vpop.f32.mrf.mxu3 }
 0x2c2   : > { %v2178_v40 = vadd.f32 %v2177_v55, %v2129_v49 }
 0x2c4   : > { %v4335_v20 = vadd.f32 %v2226_v5, %v2178_v40  ;;  %v2240_v23 = vpop.f32.mrf.mxu0  ;;  %v2289_v17 = vpop.f32.mrf.mxu1 }
 0x2c5   : > { %v2241_v16 = vadd.f32 %v2240_v23, %v4338_v41 }
 0x2c7   : > { %v2290_v2 = vadd.f32 %v2289_v17, %v2241_v16 }
 0x2c9   : > { %v2179_v31 = vpop.f32.mrf.mxu2  ;;  %v2228_v27 = vpop.f32.mrf.mxu3 }
 0x2ca   : > { %v2180_v14 = vadd.f32 %v2179_v31, %v2131_v28 }
 0x2cc   : > { %v4341_v47 = vadd.f32 %v2228_v27, %v2180_v14  ;;  %v2242_v1 = vpop.f32.mrf.mxu0  ;;  %v2291_v48 = vpop.f32.mrf.mxu1 }
 0x2cd   : > { %v2243_v42 = vadd.f32 %v2242_v1, %v4338_v41 }
 0x2cf   : > { %v2292_v32 = vadd.f32 %v2291_v48, %v2243_v42 }
 0x2d1   : > { %v2338_v12 = vpop.f32.mrf.mxu2  ;;  %v2387_v0 = vpop.f32.mrf.mxu3 }
 0x2d2   : > { %v2339_v63 = vadd.f32 %v2338_v12, %v2290_v2 }
 0x2d4   : > { %v2388_v3 = vadd.f32 %v2387_v0, %v2339_v63  ;;  %v2245_v35 = vpop.f32.mrf.mxu0  ;;  %v2294_v18 = vpop.f32.mrf.mxu1 }
 0x2d5   : > { %v2246_v6 = vadd.f32 %v2245_v35, %v4338_v41 }
 0x2d6   : > { %v2428_v46 = vpack.c.bf16 %v2388_v3, %v4265_v22 }
 0x2d7   : > { %v2295_v8 = vadd.f32 %v2294_v18, %v2246_v6 }
 0x2d8   : > { %2460 = vst [vmem:[%s4177_s12 + $0x8] sm:$0xff] %v2428_v46 }
 0x2d9   : > { %v2340_v13 = vpop.f32.mrf.mxu2  ;;  %v2389_v62 = vpop.f32.mrf.mxu3 }
 0x2da   : > { %v2341_v39 = vadd.f32 %v2340_v13, %v2292_v32 }
 0x2dc   : > { %v2390_v50 = vadd.f32 %v2389_v62, %v2341_v39  ;;  %v2247_v51 = vpop.f32.mrf.mxu0  ;;  %v2296_v59 = vpop.f32.mrf.mxu1 }
 0x2dd   : > { %v2248_v22 = vadd.f32 %v2247_v51, %v4338_v41 }
 0x2de   : > { %v2430_v10 = vpack.c.bf16 %v2390_v50, %v4270_v56 }
 0x2df   : > { %v2297_v26 = vadd.f32 %v2296_v59, %v2248_v22 }
 0x2e0   : > { %2462 = vst [vmem:[%s4177_s12 + $0x18] sm:$0xff] %v2430_v10 }
 0x2e1   : > { %v2343_v21 = vpop.f32.mrf.mxu2  ;;  %v2392_v29 = vpop.f32.mrf.mxu3 }
 0x2e2   : > { %v2344_v15 = vadd.f32 %v2343_v21, %v2295_v8 }
 0x2e4   : > { %v2393_v34 = vadd.f32 %v2392_v29, %v2344_v15  ;;  %v2250_v54 = vpop.f32.mrf.mxu0  ;;  %v2299_v7 = vpop.f32.mrf.mxu1 }
 0x2e5   : > { %v2251_v56 = vadd.f32 %v2250_v54, %v4338_v41 }
 0x2e6   : > { %v2432_v4 = vpack.c.bf16 %v2393_v34, %v4275_v38 }
 0x2e7   : > { %v2300_v58 = vadd.f32 %v2299_v7, %v2251_v56 }
 0x2e8   : > { %2464 = vst [vmem:[%s4177_s12 + $0x28] sm:$0xff] %v2432_v4 }
 0x2e9   : > { %v2345_v52 = vpop.f32.mrf.mxu2  ;;  %v2394_v19 = vpop.f32.mrf.mxu3 }
 0x2ea   : > { %v2346_v49 = vadd.f32 %v2345_v52, %v2297_v26 }
 0x2ec   : > { %v2395_v37 = vadd.f32 %v2394_v19, %v2346_v49  ;;  %v2252_v33 = vpop.f32.mrf.mxu0  ;;  %v2301_v44 = vpop.f32.mrf.mxu1 }
 0x2ed   : > { %v2253_v38 = vadd.f32 %v2252_v33, %v4338_v41 }
 0x2ee   : > { %v2434_v57 = vpack.c.bf16 %v2395_v37, %v4280_v11 }
 0x2ef   : > { %v2302_v14 = vadd.f32 %v2301_v44, %v2253_v38 }
 0x2f0   : > { %2466 = vst [vmem:[%s4177_s12 + $0x38] sm:$0xff] %v2434_v57 }
 0x2f1   : > { %v2348_v28 = vpop.f32.mrf.mxu2  ;;  %v2397_v40 = vpop.f32.mrf.mxu3 }
 0x2f2   : > { %v2349_v55 = vadd.f32 %v2348_v28, %v2300_v58 }
 0x2f4   : > { %v2398_v5 = vadd.f32 %v2397_v40, %v2349_v55  ;;  %v2255_v23 = vpop.f32.mrf.mxu0  ;;  %v2304_v17 = vpop.f32.mrf.mxu1 }
 0x2f5   : > { %v2256_v11 = vadd.f32 %v2255_v23, %v4338_v41 }
 0x2f6   : > { %v2436_v31 = vpack.c.bf16 %v2398_v5, %v4285_v30 }
 0x2f7   : > { %v2305_v0 = vadd.f32 %v2304_v17, %v2256_v11 }
 0x2f8   : > { %2468 = vst [vmem:[%s4177_s12 + $0x48] sm:$0xff] %v2436_v31 }
 0x2f9   : > { %v2350_v27 = vpop.f32.mrf.mxu2  ;;  %v2399_v1 = vpop.f32.mrf.mxu3 }
 0x2fa   : > { %v2351_v16 = vadd.f32 %v2350_v27, %v2302_v14 }
 0x2fc   : > { %v2400_v48 = vadd.f32 %v2399_v1, %v2351_v16  ;;  %v2257_v2 = vpop.f32.mrf.mxu0  ;;  %v2306_v12 = vpop.f32.mrf.mxu1 }
 0x2fd   : > { %v2258_v30 = vadd.f32 %v2257_v2, %v4338_v41 }
 0x2fe   : > { %v2438_v63 = vpack.c.bf16 %v2400_v48, %v4290_v9 }
 0x2ff   : > { %v2307_v39 = vadd.f32 %v2306_v12, %v2258_v30 }
 0x300   : > { %2470 = vst [vmem:[%s4177_s12 + $0x58] sm:$0xff] %v2438_v63 }
 0x301   : > { %v2353_v42 = vpop.f32.mrf.mxu2  ;;  %v2402_v35 = vpop.f32.mrf.mxu3 }
 0x302   : > { %v2354_v3 = vadd.f32 %v2353_v42, %v2305_v0 }
 0x304   : > { %v2403_v18 = vadd.f32 %v2402_v35, %v2354_v3  ;;  %v2260_v46 = vpop.f32.mrf.mxu0  ;;  %v2309_v32 = vpop.f32.mrf.mxu1 }
 0x305   : > { %v2261_v9 = vadd.f32 %v2260_v46, %v4338_v41 }
 0x306   : > { %v2440_v13 = vpack.c.bf16 %v2403_v18, %v4295_v24 }
 0x307   : > { %v2310_v21 = vadd.f32 %v2309_v32, %v2261_v9 }
 0x308   : > { %2472 = vst [vmem:[%s4177_s12 + $0x68] sm:$0xff] %v2440_v13 }
 0x309   : > { %v2355_v62 = vpop.f32.mrf.mxu2  ;;  %v2404_v50 = vpop.f32.mrf.mxu3 }
 0x30a   : > { %v2356_v6 = vadd.f32 %v2355_v62, %v2307_v39 }
 0x30c   : > { %v2405_v51 = vadd.f32 %v2404_v50, %v2356_v6  ;;  %v2262_v59 = vpop.f32.mrf.mxu0  ;;  %v2311_v10 = vpop.f32.mrf.mxu1 }
 0x30d   : > { %v2263_v24 = vadd.f32 %v2262_v59, %v4338_v41 }
 0x30e   : > { %v2442_v8 = vpack.c.bf16 %v2405_v51, %v4300_v45 }
 0x30f   : > { %v2312_v26 = vadd.f32 %v2311_v10, %v2263_v24 }
 0x310   : > { %2474 = vst [vmem:[%s4177_s12 + $0x78] sm:$0xff] %v2442_v8 }
 0x311   : > { %v2358_v15 = vpop.f32.mrf.mxu2  ;;  %v2407_v22 = vpop.f32.mrf.mxu3 }
 0x312   : > { %v2359_v29 = vadd.f32 %v2358_v15, %v2310_v21 }
 0x314   : > { %v2408_v34 = vadd.f32 %v2407_v22, %v2359_v29  ;;  %v2265_v54 = vpop.f32.mrf.mxu0  ;;  %v2314_v7 = vpop.f32.mrf.mxu1 }
 0x315   : > { %v2266_v45 = vadd.f32 %v2265_v54, %v4338_v41 }
 0x316   : > { %v2444_v4 = vpack.c.bf16 %v2408_v34, %v4305_v25 }
 0x317   : > { %v2315_v57 = vadd.f32 %v2314_v7, %v2266_v45 }
 0x318   : > { %2476 = vst [vmem:[%s4177_s12 + $0x88] sm:$0xff] %v2444_v4 }
 0x319   : > { %v2360_v52 = vpop.f32.mrf.mxu2  ;;  %v2409_v19 = vpop.f32.mrf.mxu3 }
 0x31a   : > { %v2361_v49 = vadd.f32 %v2360_v52, %v2312_v26 }
 0x31c   : > { %v2410_v56 = vadd.f32 %v2409_v19, %v2361_v49  ;;  %v2267_v37 = vpop.f32.mrf.mxu0  ;;  %v2316_v44 = vpop.f32.mrf.mxu1 }
 0x31d   : > { %v2268_v25 = vadd.f32 %v2267_v37, %v4338_v41 }
 0x31e   : > { %v2446_v33 = vpack.c.bf16 %v2410_v56, %v4310_v53 }
 0x31f   : > { %v2317_v23 = vadd.f32 %v2316_v44, %v2268_v25 }
 0x320   : > { %2478 = vst [vmem:[%s4177_s12 + $0x98] sm:$0xff] %v2446_v33 }
 0x321   : > { %v2363_v58 = vpop.f32.mrf.mxu2  ;;  %v2412_v55 = vpop.f32.mrf.mxu3 }
 0x322   : > { %v2364_v28 = vadd.f32 %v2363_v58, %v2315_v57 }
 0x324   : > { %v2413_v40 = vadd.f32 %v2412_v55, %v2364_v28  ;;  %v2270_v38 = vpop.f32.mrf.mxu0  ;;  %v2319_v17 = vpop.f32.mrf.mxu1 }
 0x325   : > { %v2271_v53 = vadd.f32 %v2270_v38, %v4338_v41 }
 0x326   : > { %v2448_v5 = vpack.c.bf16 %v2413_v40, %v4315_v36 }
 0x327   : > { %v2320_v48 = vadd.f32 %v2319_v17, %v2271_v53 }
 0x328   : > { %2480 = vst [vmem:[%s4177_s12 + $0xa8] sm:$0xff] %v2448_v5 }
 0x329   : > { %v2365_v31 = vpop.f32.mrf.mxu2  ;;  %v2414_v27 = vpop.f32.mrf.mxu3 }
 0x32a   : > { %v2366_v14 = vadd.f32 %v2365_v31, %v2317_v23 }
 0x32c   : > { %v2415_v16 = vadd.f32 %v2414_v27, %v2366_v14  ;;  %v2272_v1 = vpop.f32.mrf.mxu0  ;;  %v2321_v36 = vpop.f32.mrf.mxu1 }
 0x32d   : > { %v2273_v0 = vadd.f32 %v2272_v1, %v4338_v41 }
 0x32e   : > { %v2450_v11 = vpack.c.bf16 %v2415_v16, %v4320_v60 }
 0x32f   : > { %v2322_v30 = vadd.f32 %v2321_v36, %v2273_v0 }
 0x330   : > { %2482 = vst [vmem:[%s4177_s12 + $0xb8] sm:$0xff] %v2450_v11 }
 0x331   : > { %v2368_v2 = vpop.f32.mrf.mxu2  ;;  %v2417_v63 = vpop.f32.mrf.mxu3 }
 0x332   : > { %v2369_v12 = vadd.f32 %v2368_v2, %v2320_v48 }
 0x334   : > { %v2418_v42 = vadd.f32 %v2417_v63, %v2369_v12  ;;  %v2275_v35 = vpop.f32.mrf.mxu0  ;;  %v2324_v39 = vpop.f32.mrf.mxu1 }
 0x335   : > { %v2276_v60 = vadd.f32 %v2275_v35, %v4338_v41 }
 0x336   : > { %v2452_v3 = vpack.c.bf16 %v2418_v42, %v4325_v61 }
 0x337   : > { %v2325_v6 = vadd.f32 %v2324_v39, %v2276_v60 }
 0x338   : > { %2484 = vst [vmem:[%s4177_s12 + $0xc8] sm:$0xff] %v2452_v3 }
 0x339   : > { %v2370_v18 = vpop.f32.mrf.mxu2  ;;  %v2419_v32 = vpop.f32.mrf.mxu3 }
 0x33a   : > { %v2371_v46 = vadd.f32 %v2370_v18, %v2322_v30 }
 0x33c   : > { %v2420_v13 = vadd.f32 %v2419_v32, %v2371_v46  ;;  %v2277_v50 = vpop.f32.mrf.mxu0  ;;  %v2326_v21 = vpop.f32.mrf.mxu1 }
 0x33d   : > { %v2278_v59 = vadd.f32 %v2277_v50, %v4338_v41 }
 0x33e   : > { %v2454_v62 = vpack.c.bf16 %v2420_v13, %v4330_v43 }
 0x33f   : > { %v2327_v43 = vadd.f32 %v2326_v21, %v2278_v59 }
 0x340   : > { %2486 = vst [vmem:[%s4177_s12 + $0xd8] sm:$0xff] %v2454_v62 }
 0x341   : > { %v2373_v9 = vpop.f32.mrf.mxu2  ;;  %v2422_v51 = vpop.f32.mrf.mxu3 }
 0x342   : > { %v2374_v61 = vadd.f32 %v2373_v9, %v2325_v6 }
 0x344   : > { %v2423_v10 = vadd.f32 %v2422_v51, %v2374_v61 }
 0x346   : > { %v2456_v8 = vpack.c.bf16 %v2423_v10, %v4335_v20 }
 0x348   : > { %2488 = vst [vmem:[%s4177_s12 + $0xe8] sm:$0xff] %v2456_v8 }
 0x349   : > { %v2375_v15 = vpop.f32.mrf.mxu2  ;;  %v2424_v22 = vpop.f32.mrf.mxu3 }
 0x34a   : > { %v2376_v29 = vadd.f32 %v2375_v15, %v2327_v43 }
 0x34c   : > { %v2425_v41 = vadd.f32 %v2424_v22, %v2376_v29 }
 0x34e   : > { %v2458_v24 = vpack.c.bf16 %v2425_v41, %v4341_v47 }
 0x350   : > { %2490 = vst [vmem:[%s4177_s12 + $0xf8] sm:$0xff] %v2458_v24 }
 0x351   : > { %3551 = shalt.err (!%p3548_p8)
}
 0x352   : > { %s3595_s9 = smov 256   ;;  %s3596_s12 = smov 16  }
 0x353   : > { %3443 = dma.vmem_to_hbm [thread:$0]  (%p3665_p5), %s2506_s25, 4096, %s2508_s30, %s2492_s22, %s3595_s9, %s3595_s9, %s3596_s12  }
 0x354 PF: > { %p3455_p9 = scmp.ge.s32.totalorder %s3590_s21, 2  ;;  %s2522_s13 = sand.u32 1, %s3578_s18  }
 0x355   : > { %s2523_s15 = scalar_lea.sflag [#allocation4], %s2522_s13 }
 0x356   : > { %p3450_p10 = pnand %p3455_p9, %p3669_p6 }
 0x358   : > { %p3451_p11 = pneg %p3450_p10 }
 0x35a   : > { %3573 = dma.done.wait (%p3451_p11), %s2523_s15, 4096  }
 0x35b   : > { %3575 = vsyncadd (%p3451_p11), %s2523_s15, 4294963200  ;;  %p16_p12 = scmp.ge.s32.totalorder %s3652_s24, 4   ;;  %s4448_s18 = smov %s3582_s19 }
 0x35c   : > { %s4449_s19 = smov %s3586_s20  ;;  %s4450_s20 = smov %s3663_s27 }
 0x35d   : > { %s4451_s21 = smov %s3652_s24  ;;  %18 = sbr.rel (!%p16_p12) target bundleno = 4 (0x4), region = 80 }
 0x362   :  { %2529 = vsyncpa [#allocation3], 1 }
 0x363   :  { %2531 = vsyncpa [#allocation3 + $0x1], 1 }
 0x364   :  { %2532 = vsyncpa [#allocation4], 1 }
 0x365   :  { %2534 = vsyncpa [#allocation4 + $0x1], 1 }

</bundles_post_ra>
